<compile_context>
chip_gen: v7x
topology: tpu7x:2x2x1
jax: 0.10.0
libtpu: 0.0.40
codegen_flags: <defaults>
</compile_context>

<pallas_src>
import functools

import jax
import jax.numpy as jnp
from jax.experimental import pallas as pl
from jax.experimental.pallas import tpu as pltpu


# ---------------------------------------------------------------------------
# Fused Pallas kernel: all LSTM layers + ReLU + Linear
# ---------------------------------------------------------------------------

def _make_fused_kernel(num_layers, seq_len, batch, hidden_dim, matmul_dtype):
    T, B, H = seq_len, batch, hidden_dim

    def kernel(x_ref, *refs):
        # refs = (wih_0, whh_0, b_0, ..., wih_{L-1}, whh_{L-1}, b_{L-1},
        #         w_fc_row, b_fc, out_ref)
        out_ref = refs[-1]           # (1, T*B)  lane-dense output
        bfc_ref = refs[-2]           # (1, 1)    f32
        wfc_ref = refs[-3]           # (1, H)    f32
        layer_refs = refs[:3 * num_layers]

        # Layer-input sequence carried as an on-chip value (already matmul_dtype).
        seq = x_ref[...]                                        # (T*B, Din)
        h_seq = None
        for layer in range(num_layers):
            wih_ref, whh_ref, b_ref = layer_refs[3 * layer:3 * layer + 3]
            wih = wih_ref[...]                                  # (Din, 4H) matmul_dtype
            whh = whh_ref[...]                                  # (H, 4H)   matmul_dtype

            # Hoisted input projection: ONE MXU matmul for the whole sequence,
            # combined bias folded in. Gate columns are pre-ordered [i, f, o, g].
            gx = jnp.dot(seq, wih,
                         preferred_element_type=jnp.float32) + b_ref[...]  # (T*B,4H) f32

            # Recurrence: h/c carried in vregs; fully unrolled over T (static, small).
            h = jnp.zeros((B, H), jnp.float32)
            c = jnp.zeros((B, H), jnp.float32)
            hs = []
            for t in range(T):
                gates = gx[t * B:(t + 1) * B, :] + jnp.dot(
                    h.astype(matmul_dtype), whh,
                    preferred_element_type=jnp.float32)         # (B, 4H) f32
                # One sigmoid over the contiguous [i|f|o] slab + one tanh over g.
                sig = jax.nn.sigmoid(gates[:, :3 * H])          # (B, 3H)
                g_g = jnp.tanh(gates[:, 3 * H:])                # (B, H)
                i_g = sig[:, 0 * H:1 * H]
                f_g = sig[:, 1 * H:2 * H]
                o_g = sig[:, 2 * H:3 * H]
                c = f_g * c + i_g * g_g
                h = o_g * jnp.tanh(c)
                hs.append(h)                                    # stays in vregs

            # Single combine per layer instead of T masked 2-row sub-tile stores.
            h_seq = jnp.concatenate(hs, axis=0)                 # (T*B, H) f32 value
            if layer + 1 < num_layers:
                seq = h_seq.astype(matmul_dtype)

        # TODO(synk): inter-layer dropout (drop_prob > 0, training mode) not
        # implemented; module default drop_prob=0.0 so eval semantics are exact.

        # fc(relu(h_seq)) emitted lane-dense as (1, T*B): tiny M=1 matmul with the
        # contraction on the last dim of BOTH operands (no explicit transpose).
        relu_h = jnp.maximum(h_seq, 0.0)                        # (T*B, H) f32
        y = jax.lax.dot_general(
            wfc_ref[...], relu_h,
            dimension_numbers=(((1,), (1,)), ((), ())),
            preferred_element_type=jnp.float32)                 # (1, T*B)
        out_ref[...] = y + bfc_ref[...]

    return kernel


# ---------------------------------------------------------------------------
# Wrapper
# ---------------------------------------------------------------------------

_VMEM_SPEC = pl.BlockSpec(memory_space=pltpu.MemorySpace.VMEM)


def _reorder_gates_ifgo_to_ifog(a, hidden_dim):
    """Reorder PyTorch gate columns [i, f, g, o] -> [i, f, o, g] (last axis)."""
    H = hidden_dim
    return jnp.concatenate(
        [a[..., 0:2 * H], a[..., 3 * H:4 * H], a[..., 2 * H:3 * H]], axis=-1)


def _compiler_params():
    # Derive the scoped-VMEM limit from the actual chip (v7x: 64 MiB physical,
    # v5e/v6e: 128 MiB) instead of hard-coding a number.
    try:
        cap = pltpu.get_tpu_info().vmem_capacity_bytes
        return pltpu.CompilerParams(vmem_limit_bytes=int(cap // 2))
    except Exception:
        return pltpu.CompilerParams()


def _fused_forward(x, params, num_layers, matmul_dtype):
    T, B, F = x.shape
    H = params["layer0"][1].shape[0]

    # Pre-cast matmul operands (x and weights) in the wrapper: halves HBM->VMEM
    # DMA bytes / VMEM residency and removes per-invocation casts from the kernel.
    def cast(a):
        return a if matmul_dtype == jnp.float32 else a.astype(matmul_dtype)

    inputs = [cast(x.reshape(T * B, F))]
    for layer in range(num_layers):
        w_ih_t, w_hh_t, b = params[f"layer{layer}"]
        inputs.append(cast(_reorder_gates_ifgo_to_ifog(w_ih_t, H)))
        inputs.append(cast(_reorder_gates_ifgo_to_ifog(w_hh_t, H)))
        inputs.append(_reorder_gates_ifgo_to_ifog(b, H))        # bias stays f32
    w_fc_t, b_fc = params["fc"]
    inputs.append(w_fc_t.reshape(1, H))                         # fc weight row, f32
    inputs.append(b_fc)                                         # (1, 1) f32

    kernel = _make_fused_kernel(num_layers, T, B, H, matmul_dtype)

    # TODO(synk): for large T/B/H add a time-chunk grid (BlockSpec over T with a
    # resident h/c scratch, 'arbitrary' time axis) plus a 'parallel' batch axis so
    # v7x's second TensorCore is used and DMA/compute are pipelined; at these toy
    # shapes a single whole-array-in-VMEM call is fastest.
    y = pl.pallas_call(
        kernel,
        out_shape=jax.ShapeDtypeStruct((1, T * B), jnp.float32),
        in_specs=[_VMEM_SPEC] * len(inputs),
        out_specs=_VMEM_SPEC,
        compiler_params=_compiler_params(),
    )(*inputs)
    # Lane-dense (1, T*B) kernel output -> (T, B, 1), matching time-major PyTorch.
    return y.reshape(T, B, 1)


@functools.partial(jax.jit, static_argnames=("num_layers", "matmul_dtype"))
def lstm_forward(x, params, num_layers, matmul_dtype=jnp.bfloat16):
    """Pallas implementation of LSTM.forward: fc(relu(lstm(x)[0]))."""
    return _fused_forward(x, params, num_layers, matmul_dtype)


# ---------------------------------------------------------------------------
# Pure-JAX reference (PyTorch gate order / math, for correctness check)
# ---------------------------------------------------------------------------

def lstm_forward_ref(x, params, num_layers):
    T, B, _ = x.shape
    h_seq = x
    for layer in range(num_layers):
        w_ih_t, w_hh_t, b = params[f"layer{layer}"]
        H = w_hh_t.shape[0]
        h = jnp.zeros((B, H), jnp.float32)
        c = jnp.zeros((B, H), jnp.float32)
        outs = []
        for t in range(T):
            gates = h_seq[t] @ w_ih_t + h @ w_hh_t + b
            i = jax.nn.sigmoid(gates[:, 0 * H:1 * H])
            f = jax.nn.sigmoid(gates[:, 1 * H:2 * H])
            g = jnp.tanh(gates[:, 2 * H:3 * H])
            o = jax.nn.sigmoid(gates[:, 3 * H:4 * H])
            c = f * c + i * g
            h = o * jnp.tanh(c)
            outs.append(h)
        h_seq = jnp.stack(outs, axis=0)
    w_fc_t, b_fc = params["fc"]
    return jnp.maximum(h_seq, 0.0) @ w_fc_t + b_fc


# ---------------------------------------------------------------------------
# Deterministic parameter construction (PyTorch-style shapes / gate order)
# ---------------------------------------------------------------------------

def make_params(key, input_size, hidden_dim, num_layers):
    params = {}
    bound = 1.0 / (hidden_dim ** 0.5)
    for layer in range(num_layers):
        d_in = input_size if layer == 0 else hidden_dim
        key, k1, k2, k3, k4 = jax.random.split(key, 5)
        # PyTorch stores weight_ih_l{k}: (4H, d_in) with gate order [i,f,g,o];
        # we keep the transpose and the combined bias (b_ih + b_hh).
        w_ih_t = jax.random.uniform(k1, (d_in, 4 * hidden_dim), jnp.float32, -bound, bound)
        w_hh_t = jax.random.uniform(k2, (hidden_dim, 4 * hidden_dim), jnp.float32, -bound, bound)
        b_ih = jax.random.uniform(k3, (4 * hidden_dim,), jnp.float32, -bound, bound)
        b_hh = jax.random.uniform(k4, (4 * hidden_dim,), jnp.float32, -bound, bound)
        params[f"layer{layer}"] = (w_ih_t, w_hh_t, (b_ih + b_hh).reshape(1, 4 * hidden_dim))
    key, k1, k2 = jax.random.split(key, 3)
    w_fc_t = jax.random.uniform(k1, (hidden_dim, 1), jnp.float32, -bound, bound)
    b_fc = jax.random.uniform(k2, (1, 1), jnp.float32, -bound, bound)
    params["fc"] = (w_fc_t, b_fc)
    return params


if __name__ == "__main__":
    # Small shapes implied by the module: seq (training_lookback) x features,
    # hidden_dim, num_hidden_layers. We add a batch dim of 2 (time-major).
    T, B, F = 8, 2, 4          # seq_len, batch, input_size (= #dataframe columns)
    H, L = 32, 2               # hidden_dim, num_hidden_layers

    key = jax.random.PRNGKey(0)
    key, kx = jax.random.split(key)
    x = jax.random.normal(kx, (T, B, F), jnp.float32)
    params = make_params(key, F, H, L)

    ref = lstm_forward_ref(x, params, L)

    # Exact-path check (f32 matmul operands).
    out_f32 = lstm_forward(x, params, num_layers=L, matmul_dtype=jnp.float32)
    out_f32 = jax.block_until_ready(out_f32)
    assert out_f32.shape == (T, B, 1), out_f32.shape
    assert jnp.allclose(out_f32, ref, atol=1e-4, rtol=1e-4), \
        float(jnp.max(jnp.abs(out_f32 - ref)))

    # Fast path: bf16 matmul operands, f32 accumulation + f32 gate elementwise.
    out_bf16 = lstm_forward(x, params, num_layers=L, matmul_dtype=jnp.bfloat16)
    out_bf16 = jax.block_until_ready(out_bf16)
    assert out_bf16.shape == (T, B, 1), out_bf16.shape
    assert jnp.allclose(out_bf16, ref, atol=3e-2, rtol=3e-2), \
        float(jnp.max(jnp.abs(out_bf16 - ref)))

    print("KERNEL_OK")
</pallas_src>

<mosaic_0001>
module attributes {stable_mosaic.version = 11 : i64} {
  func.func @kernel(%arg0: memref<16x4xf32, #tpu.memory_space<vmem>>, %arg1: memref<4x128xf32, #tpu.memory_space<vmem>>, %arg2: memref<32x128xf32, #tpu.memory_space<vmem>>, %arg3: memref<1x128xf32, #tpu.memory_space<vmem>>, %arg4: memref<32x128xf32, #tpu.memory_space<vmem>>, %arg5: memref<32x128xf32, #tpu.memory_space<vmem>>, %arg6: memref<1x128xf32, #tpu.memory_space<vmem>>, %arg7: memref<1x32xf32, #tpu.memory_space<vmem>>, %arg8: memref<1x1xf32, #tpu.memory_space<vmem>>, %arg9: memref<1x16xf32, #tpu.memory_space<vmem>>) attributes {dimension_semantics = [], scalar_prefetch = 0 : i64, scratch_operands = 0 : i64, tpu.core_type = #tpu.core_type<tc>} {
    %c0 = arith.constant 0 : index
    %c0_0 = arith.constant 0 : index
    %0 = vector.load %arg0[%c0, %c0_0] : memref<16x4xf32, #tpu.memory_space<vmem>>, vector<16x4xf32>
    %c0_1 = arith.constant 0 : index
    %c0_2 = arith.constant 0 : index
    %1 = vector.load %arg1[%c0_1, %c0_2] : memref<4x128xf32, #tpu.memory_space<vmem>>, vector<4x128xf32>
    %c0_3 = arith.constant 0 : index
    %c0_4 = arith.constant 0 : index
    %2 = vector.load %arg2[%c0_3, %c0_4] : memref<32x128xf32, #tpu.memory_space<vmem>>, vector<32x128xf32>
    %cst = arith.constant dense<0.000000e+00> : vector<16x128xf32>
    %3 = tpu.matmul %0, %1, %cst {dimension_numbers = #tpu.dot_dimension_numbers<[1], [0], [0], [1], [0, 0, 1, 1], [], []>} : vector<16x4xf32>, vector<4x128xf32>, vector<16x128xf32> -> vector<16x128xf32>
    %c0_5 = arith.constant 0 : index
    %c0_6 = arith.constant 0 : index
    %4 = vector.load %arg3[%c0_5, %c0_6] : memref<1x128xf32, #tpu.memory_space<vmem>>, vector<1x128xf32>
    %5 = vector.broadcast %4 : vector<1x128xf32> to vector<16x128xf32>
    %6 = arith.addf %3, %5 : vector<16x128xf32>
    %cst_7 = arith.constant 0.000000e+00 : f32
    %7 = vector.broadcast %cst_7 : f32 to vector<2x32xf32>
    %cst_8 = arith.constant 0.000000e+00 : f32
    %8 = vector.broadcast %cst_8 : f32 to vector<2x32xf32>
    %9 = vector.extract_strided_slice %6 {offsets = [0, 0], sizes = [2, 128], strides = [1, 1]} : vector<16x128xf32> to vector<2x128xf32>
    %cst_9 = arith.constant dense<0.000000e+00> : vector<2x128xf32>
    %10 = tpu.matmul %7, %2, %cst_9 {dimension_numbers = #tpu.dot_dimension_numbers<[1], [0], [0], [1], [0, 0, 1, 1], [], []>} : vector<2x32xf32>, vector<32x128xf32>, vector<2x128xf32> -> vector<2x128xf32>
    %11 = arith.addf %9, %10 : vector<2x128xf32>
    %12 = vector.extract_strided_slice %11 {offsets = [0, 0], sizes = [2, 96], strides = [1, 1]} : vector<2x128xf32> to vector<2x96xf32>
    %13 = arith.negf %12 : vector<2x96xf32>
    %14 = math.exp %13 : vector<2x96xf32>
    %cst_10 = arith.constant 1.000000e+00 : f32
    %15 = vector.broadcast %cst_10 : f32 to vector<2x96xf32>
    %16 = arith.addf %15, %14 : vector<2x96xf32>
    %17 = arith.divf %15, %16 : vector<2x96xf32>
    %18 = vector.extract_strided_slice %11 {offsets = [0, 96], sizes = [2, 32], strides = [1, 1]} : vector<2x128xf32> to vector<2x32xf32>
    %19 = math.tanh %18 : vector<2x32xf32>
    %20 = vector.extract_strided_slice %17 {offsets = [0, 0], sizes = [2, 32], strides = [1, 1]} : vector<2x96xf32> to vector<2x32xf32>
    %21 = vector.extract_strided_slice %17 {offsets = [0, 32], sizes = [2, 32], strides = [1, 1]} : vector<2x96xf32> to vector<2x32xf32>
    %22 = vector.extract_strided_slice %17 {offsets = [0, 64], sizes = [2, 32], strides = [1, 1]} : vector<2x96xf32> to vector<2x32xf32>
    %23 = arith.mulf %21, %8 : vector<2x32xf32>
    %24 = arith.mulf %20, %19 : vector<2x32xf32>
    %25 = arith.addf %23, %24 : vector<2x32xf32>
    %26 = math.tanh %25 : vector<2x32xf32>
    %27 = arith.mulf %22, %26 : vector<2x32xf32>
    %28 = vector.extract_strided_slice %6 {offsets = [2, 0], sizes = [2, 128], strides = [1, 1]} : vector<16x128xf32> to vector<2x128xf32>
    %cst_11 = arith.constant dense<0.000000e+00> : vector<2x128xf32>
    %29 = tpu.matmul %27, %2, %cst_11 {dimension_numbers = #tpu.dot_dimension_numbers<[1], [0], [0], [1], [0, 0, 1, 1], [], []>} : vector<2x32xf32>, vector<32x128xf32>, vector<2x128xf32> -> vector<2x128xf32>
    %30 = arith.addf %28, %29 : vector<2x128xf32>
    %31 = vector.extract_strided_slice %30 {offsets = [0, 0], sizes = [2, 96], strides = [1, 1]} : vector<2x128xf32> to vector<2x96xf32>
    %32 = arith.negf %31 : vector<2x96xf32>
    %33 = math.exp %32 : vector<2x96xf32>
    %cst_12 = arith.constant 1.000000e+00 : f32
    %34 = vector.broadcast %cst_12 : f32 to vector<2x96xf32>
    %35 = arith.addf %34, %33 : vector<2x96xf32>
    %36 = arith.divf %34, %35 : vector<2x96xf32>
    %37 = vector.extract_strided_slice %30 {offsets = [0, 96], sizes = [2, 32], strides = [1, 1]} : vector<2x128xf32> to vector<2x32xf32>
    %38 = math.tanh %37 : vector<2x32xf32>
    %39 = vector.extract_strided_slice %36 {offsets = [0, 0], sizes = [2, 32], strides = [1, 1]} : vector<2x96xf32> to vector<2x32xf32>
    %40 = vector.extract_strided_slice %36 {offsets = [0, 32], sizes = [2, 32], strides = [1, 1]} : vector<2x96xf32> to vector<2x32xf32>
    %41 = vector.extract_strided_slice %36 {offsets = [0, 64], sizes = [2, 32], strides = [1, 1]} : vector<2x96xf32> to vector<2x32xf32>
    %42 = arith.mulf %40, %25 : vector<2x32xf32>
    %43 = arith.mulf %39, %38 : vector<2x32xf32>
    %44 = arith.addf %42, %43 : vector<2x32xf32>
    %45 = math.tanh %44 : vector<2x32xf32>
    %46 = arith.mulf %41, %45 : vector<2x32xf32>
    %47 = vector.extract_strided_slice %6 {offsets = [4, 0], sizes = [2, 128], strides = [1, 1]} : vector<16x128xf32> to vector<2x128xf32>
    %cst_13 = arith.constant dense<0.000000e+00> : vector<2x128xf32>
    %48 = tpu.matmul %46, %2, %cst_13 {dimension_numbers = #tpu.dot_dimension_numbers<[1], [0], [0], [1], [0, 0, 1, 1], [], []>} : vector<2x32xf32>, vector<32x128xf32>, vector<2x128xf32> -> vector<2x128xf32>
    %49 = arith.addf %47, %48 : vector<2x128xf32>
    %50 = vector.extract_strided_slice %49 {offsets = [0, 0], sizes = [2, 96], strides = [1, 1]} : vector<2x128xf32> to vector<2x96xf32>
    %51 = arith.negf %50 : vector<2x96xf32>
    %52 = math.exp %51 : vector<2x96xf32>
    %cst_14 = arith.constant 1.000000e+00 : f32
    %53 = vector.broadcast %cst_14 : f32 to vector<2x96xf32>
    %54 = arith.addf %53, %52 : vector<2x96xf32>
    %55 = arith.divf %53, %54 : vector<2x96xf32>
    %56 = vector.extract_strided_slice %49 {offsets = [0, 96], sizes = [2, 32], strides = [1, 1]} : vector<2x128xf32> to vector<2x32xf32>
    %57 = math.tanh %56 : vector<2x32xf32>
    %58 = vector.extract_strided_slice %55 {offsets = [0, 0], sizes = [2, 32], strides = [1, 1]} : vector<2x96xf32> to vector<2x32xf32>
    %59 = vector.extract_strided_slice %55 {offsets = [0, 32], sizes = [2, 32], strides = [1, 1]} : vector<2x96xf32> to vector<2x32xf32>
    %60 = vector.extract_strided_slice %55 {offsets = [0, 64], sizes = [2, 32], strides = [1, 1]} : vector<2x96xf32> to vector<2x32xf32>
    %61 = arith.mulf %59, %44 : vector<2x32xf32>
    %62 = arith.mulf %58, %57 : vector<2x32xf32>
    %63 = arith.addf %61, %62 : vector<2x32xf32>
    %64 = math.tanh %63 : vector<2x32xf32>
    %65 = arith.mulf %60, %64 : vector<2x32xf32>
    %66 = vector.extract_strided_slice %6 {offsets = [6, 0], sizes = [2, 128], strides = [1, 1]} : vector<16x128xf32> to vector<2x128xf32>
    %cst_15 = arith.constant dense<0.000000e+00> : vector<2x128xf32>
    %67 = tpu.matmul %65, %2, %cst_15 {dimension_numbers = #tpu.dot_dimension_numbers<[1], [0], [0], [1], [0, 0, 1, 1], [], []>} : vector<2x32xf32>, vector<32x128xf32>, vector<2x128xf32> -> vector<2x128xf32>
    %68 = arith.addf %66, %67 : vector<2x128xf32>
    %69 = vector.extract_strided_slice %68 {offsets = [0, 0], sizes = [2, 96], strides = [1, 1]} : vector<2x128xf32> to vector<2x96xf32>
    %70 = arith.negf %69 : vector<2x96xf32>
    %71 = math.exp %70 : vector<2x96xf32>
    %cst_16 = arith.constant 1.000000e+00 : f32
    %72 = vector.broadcast %cst_16 : f32 to vector<2x96xf32>
    %73 = arith.addf %72, %71 : vector<2x96xf32>
    %74 = arith.divf %72, %73 : vector<2x96xf32>
    %75 = vector.extract_strided_slice %68 {offsets = [0, 96], sizes = [2, 32], strides = [1, 1]} : vector<2x128xf32> to vector<2x32xf32>
    %76 = math.tanh %75 : vector<2x32xf32>
    %77 = vector.extract_strided_slice %74 {offsets = [0, 0], sizes = [2, 32], strides = [1, 1]} : vector<2x96xf32> to vector<2x32xf32>
    %78 = vector.extract_strided_slice %74 {offsets = [0, 32], sizes = [2, 32], strides = [1, 1]} : vector<2x96xf32> to vector<2x32xf32>
    %79 = vector.extract_strided_slice %74 {offsets = [0, 64], sizes = [2, 32], strides = [1, 1]} : vector<2x96xf32> to vector<2x32xf32>
    %80 = arith.mulf %78, %63 : vector<2x32xf32>
    %81 = arith.mulf %77, %76 : vector<2x32xf32>
    %82 = arith.addf %80, %81 : vector<2x32xf32>
    %83 = math.tanh %82 : vector<2x32xf32>
    %84 = arith.mulf %79, %83 : vector<2x32xf32>
    %85 = vector.extract_strided_slice %6 {offsets = [8, 0], sizes = [2, 128], strides = [1, 1]} : vector<16x128xf32> to vector<2x128xf32>
    %cst_17 = arith.constant dense<0.000000e+00> : vector<2x128xf32>
    %86 = tpu.matmul %84, %2, %cst_17 {dimension_numbers = #tpu.dot_dimension_numbers<[1], [0], [0], [1], [0, 0, 1, 1], [], []>} : vector<2x32xf32>, vector<32x128xf32>, vector<2x128xf32> -> vector<2x128xf32>
    %87 = arith.addf %85, %86 : vector<2x128xf32>
    %88 = vector.extract_strided_slice %87 {offsets = [0, 0], sizes = [2, 96], strides = [1, 1]} : vector<2x128xf32> to vector<2x96xf32>
    %89 = arith.negf %88 : vector<2x96xf32>
    %90 = math.exp %89 : vector<2x96xf32>
    %cst_18 = arith.constant 1.000000e+00 : f32
    %91 = vector.broadcast %cst_18 : f32 to vector<2x96xf32>
    %92 = arith.addf %91, %90 : vector<2x96xf32>
    %93 = arith.divf %91, %92 : vector<2x96xf32>
    %94 = vector.extract_strided_slice %87 {offsets = [0, 96], sizes = [2, 32], strides = [1, 1]} : vector<2x128xf32> to vector<2x32xf32>
    %95 = math.tanh %94 : vector<2x32xf32>
    %96 = vector.extract_strided_slice %93 {offsets = [0, 0], sizes = [2, 32], strides = [1, 1]} : vector<2x96xf32> to vector<2x32xf32>
    %97 = vector.extract_strided_slice %93 {offsets = [0, 32], sizes = [2, 32], strides = [1, 1]} : vector<2x96xf32> to vector<2x32xf32>
    %98 = vector.extract_strided_slice %93 {offsets = [0, 64], sizes = [2, 32], strides = [1, 1]} : vector<2x96xf32> to vector<2x32xf32>
    %99 = arith.mulf %97, %82 : vector<2x32xf32>
    %100 = arith.mulf %96, %95 : vector<2x32xf32>
    %101 = arith.addf %99, %100 : vector<2x32xf32>
    %102 = math.tanh %101 : vector<2x32xf32>
    %103 = arith.mulf %98, %102 : vector<2x32xf32>
    %104 = vector.extract_strided_slice %6 {offsets = [10, 0], sizes = [2, 128], strides = [1, 1]} : vector<16x128xf32> to vector<2x128xf32>
    %cst_19 = arith.constant dense<0.000000e+00> : vector<2x128xf32>
    %105 = tpu.matmul %103, %2, %cst_19 {dimension_numbers = #tpu.dot_dimension_numbers<[1], [0], [0], [1], [0, 0, 1, 1], [], []>} : vector<2x32xf32>, vector<32x128xf32>, vector<2x128xf32> -> vector<2x128xf32>
    %106 = arith.addf %104, %105 : vector<2x128xf32>
    %107 = vector.extract_strided_slice %106 {offsets = [0, 0], sizes = [2, 96], strides = [1, 1]} : vector<2x128xf32> to vector<2x96xf32>
    %108 = arith.negf %107 : vector<2x96xf32>
    %109 = math.exp %108 : vector<2x96xf32>
    %cst_20 = arith.constant 1.000000e+00 : f32
    %110 = vector.broadcast %cst_20 : f32 to vector<2x96xf32>
    %111 = arith.addf %110, %109 : vector<2x96xf32>
    %112 = arith.divf %110, %111 : vector<2x96xf32>
    %113 = vector.extract_strided_slice %106 {offsets = [0, 96], sizes = [2, 32], strides = [1, 1]} : vector<2x128xf32> to vector<2x32xf32>
    %114 = math.tanh %113 : vector<2x32xf32>
    %115 = vector.extract_strided_slice %112 {offsets = [0, 0], sizes = [2, 32], strides = [1, 1]} : vector<2x96xf32> to vector<2x32xf32>
    %116 = vector.extract_strided_slice %112 {offsets = [0, 32], sizes = [2, 32], strides = [1, 1]} : vector<2x96xf32> to vector<2x32xf32>
    %117 = vector.extract_strided_slice %112 {offsets = [0, 64], sizes = [2, 32], strides = [1, 1]} : vector<2x96xf32> to vector<2x32xf32>
    %118 = arith.mulf %116, %101 : vector<2x32xf32>
    %119 = arith.mulf %115, %114 : vector<2x32xf32>
    %120 = arith.addf %118, %119 : vector<2x32xf32>
    %121 = math.tanh %120 : vector<2x32xf32>
    %122 = arith.mulf %117, %121 : vector<2x32xf32>
    %123 = vector.extract_strided_slice %6 {offsets = [12, 0], sizes = [2, 128], strides = [1, 1]} : vector<16x128xf32> to vector<2x128xf32>
    %cst_21 = arith.constant dense<0.000000e+00> : vector<2x128xf32>
    %124 = tpu.matmul %122, %2, %cst_21 {dimension_numbers = #tpu.dot_dimension_numbers<[1], [0], [0], [1], [0, 0, 1, 1], [], []>} : vector<2x32xf32>, vector<32x128xf32>, vector<2x128xf32> -> vector<2x128xf32>
    %125 = arith.addf %123, %124 : vector<2x128xf32>
    %126 = vector.extract_strided_slice %125 {offsets = [0, 0], sizes = [2, 96], strides = [1, 1]} : vector<2x128xf32> to vector<2x96xf32>
    %127 = arith.negf %126 : vector<2x96xf32>
    %128 = math.exp %127 : vector<2x96xf32>
    %cst_22 = arith.constant 1.000000e+00 : f32
    %129 = vector.broadcast %cst_22 : f32 to vector<2x96xf32>
    %130 = arith.addf %129, %128 : vector<2x96xf32>
    %131 = arith.divf %129, %130 : vector<2x96xf32>
    %132 = vector.extract_strided_slice %125 {offsets = [0, 96], sizes = [2, 32], strides = [1, 1]} : vector<2x128xf32> to vector<2x32xf32>
    %133 = math.tanh %132 : vector<2x32xf32>
    %134 = vector.extract_strided_slice %131 {offsets = [0, 0], sizes = [2, 32], strides = [1, 1]} : vector<2x96xf32> to vector<2x32xf32>
    %135 = vector.extract_strided_slice %131 {offsets = [0, 32], sizes = [2, 32], strides = [1, 1]} : vector<2x96xf32> to vector<2x32xf32>
    %136 = vector.extract_strided_slice %131 {offsets = [0, 64], sizes = [2, 32], strides = [1, 1]} : vector<2x96xf32> to vector<2x32xf32>
    %137 = arith.mulf %135, %120 : vector<2x32xf32>
    %138 = arith.mulf %134, %133 : vector<2x32xf32>
    %139 = arith.addf %137, %138 : vector<2x32xf32>
    %140 = math.tanh %139 : vector<2x32xf32>
    %141 = arith.mulf %136, %140 : vector<2x32xf32>
    %142 = vector.extract_strided_slice %6 {offsets = [14, 0], sizes = [2, 128], strides = [1, 1]} : vector<16x128xf32> to vector<2x128xf32>
    %cst_23 = arith.constant dense<0.000000e+00> : vector<2x128xf32>
    %143 = tpu.matmul %141, %2, %cst_23 {dimension_numbers = #tpu.dot_dimension_numbers<[1], [0], [0], [1], [0, 0, 1, 1], [], []>} : vector<2x32xf32>, vector<32x128xf32>, vector<2x128xf32> -> vector<2x128xf32>
    %144 = arith.addf %142, %143 : vector<2x128xf32>
    %145 = vector.extract_strided_slice %144 {offsets = [0, 0], sizes = [2, 96], strides = [1, 1]} : vector<2x128xf32> to vector<2x96xf32>
    %146 = arith.negf %145 : vector<2x96xf32>
    %147 = math.exp %146 : vector<2x96xf32>
    %cst_24 = arith.constant 1.000000e+00 : f32
    %148 = vector.broadcast %cst_24 : f32 to vector<2x96xf32>
    %149 = arith.addf %148, %147 : vector<2x96xf32>
    %150 = arith.divf %148, %149 : vector<2x96xf32>
    %151 = vector.extract_strided_slice %144 {offsets = [0, 96], sizes = [2, 32], strides = [1, 1]} : vector<2x128xf32> to vector<2x32xf32>
    %152 = math.tanh %151 : vector<2x32xf32>
    %153 = vector.extract_strided_slice %150 {offsets = [0, 0], sizes = [2, 32], strides = [1, 1]} : vector<2x96xf32> to vector<2x32xf32>
    %154 = vector.extract_strided_slice %150 {offsets = [0, 32], sizes = [2, 32], strides = [1, 1]} : vector<2x96xf32> to vector<2x32xf32>
    %155 = vector.extract_strided_slice %150 {offsets = [0, 64], sizes = [2, 32], strides = [1, 1]} : vector<2x96xf32> to vector<2x32xf32>
    %156 = arith.mulf %154, %139 : vector<2x32xf32>
    %157 = arith.mulf %153, %152 : vector<2x32xf32>
    %158 = arith.addf %156, %157 : vector<2x32xf32>
    %159 = math.tanh %158 : vector<2x32xf32>
    %160 = arith.mulf %155, %159 : vector<2x32xf32>
    %161 = tpu.concatenate %27, %46, %65, %84, %103, %122, %141, %160 in 0 : vector<2x32xf32>, vector<2x32xf32>, vector<2x32xf32>, vector<2x32xf32>, vector<2x32xf32>, vector<2x32xf32>, vector<2x32xf32>, vector<2x32xf32> -> vector<16x32xf32>
    %c0_25 = arith.constant 0 : index
    %c0_26 = arith.constant 0 : index
    %162 = vector.load %arg4[%c0_25, %c0_26] : memref<32x128xf32, #tpu.memory_space<vmem>>, vector<32x128xf32>
    %c0_27 = arith.constant 0 : index
    %c0_28 = arith.constant 0 : index
    %163 = vector.load %arg5[%c0_27, %c0_28] : memref<32x128xf32, #tpu.memory_space<vmem>>, vector<32x128xf32>
    %cst_29 = arith.constant dense<0.000000e+00> : vector<16x128xf32>
    %164 = tpu.matmul %161, %162, %cst_29 {dimension_numbers = #tpu.dot_dimension_numbers<[1], [0], [0], [1], [0, 0, 1, 1], [], []>} : vector<16x32xf32>, vector<32x128xf32>, vector<16x128xf32> -> vector<16x128xf32>
    %c0_30 = arith.constant 0 : index
    %c0_31 = arith.constant 0 : index
    %165 = vector.load %arg6[%c0_30, %c0_31] : memref<1x128xf32, #tpu.memory_space<vmem>>, vector<1x128xf32>
    %166 = vector.broadcast %165 : vector<1x128xf32> to vector<16x128xf32>
    %167 = arith.addf %164, %166 : vector<16x128xf32>
    %cst_32 = arith.constant 0.000000e+00 : f32
    %168 = vector.broadcast %cst_32 : f32 to vector<2x32xf32>
    %cst_33 = arith.constant 0.000000e+00 : f32
    %169 = vector.broadcast %cst_33 : f32 to vector<2x32xf32>
    %170 = vector.extract_strided_slice %167 {offsets = [0, 0], sizes = [2, 128], strides = [1, 1]} : vector<16x128xf32> to vector<2x128xf32>
    %cst_34 = arith.constant dense<0.000000e+00> : vector<2x128xf32>
    %171 = tpu.matmul %168, %163, %cst_34 {dimension_numbers = #tpu.dot_dimension_numbers<[1], [0], [0], [1], [0, 0, 1, 1], [], []>} : vector<2x32xf32>, vector<32x128xf32>, vector<2x128xf32> -> vector<2x128xf32>
    %172 = arith.addf %170, %171 : vector<2x128xf32>
    %173 = vector.extract_strided_slice %172 {offsets = [0, 0], sizes = [2, 96], strides = [1, 1]} : vector<2x128xf32> to vector<2x96xf32>
    %174 = arith.negf %173 : vector<2x96xf32>
    %175 = math.exp %174 : vector<2x96xf32>
    %cst_35 = arith.constant 1.000000e+00 : f32
    %176 = vector.broadcast %cst_35 : f32 to vector<2x96xf32>
    %177 = arith.addf %176, %175 : vector<2x96xf32>
    %178 = arith.divf %176, %177 : vector<2x96xf32>
    %179 = vector.extract_strided_slice %172 {offsets = [0, 96], sizes = [2, 32], strides = [1, 1]} : vector<2x128xf32> to vector<2x32xf32>
    %180 = math.tanh %179 : vector<2x32xf32>
    %181 = vector.extract_strided_slice %178 {offsets = [0, 0], sizes = [2, 32], strides = [1, 1]} : vector<2x96xf32> to vector<2x32xf32>
    %182 = vector.extract_strided_slice %178 {offsets = [0, 32], sizes = [2, 32], strides = [1, 1]} : vector<2x96xf32> to vector<2x32xf32>
    %183 = vector.extract_strided_slice %178 {offsets = [0, 64], sizes = [2, 32], strides = [1, 1]} : vector<2x96xf32> to vector<2x32xf32>
    %184 = arith.mulf %182, %169 : vector<2x32xf32>
    %185 = arith.mulf %181, %180 : vector<2x32xf32>
    %186 = arith.addf %184, %185 : vector<2x32xf32>
    %187 = math.tanh %186 : vector<2x32xf32>
    %188 = arith.mulf %183, %187 : vector<2x32xf32>
    %189 = vector.extract_strided_slice %167 {offsets = [2, 0], sizes = [2, 128], strides = [1, 1]} : vector<16x128xf32> to vector<2x128xf32>
    %cst_36 = arith.constant dense<0.000000e+00> : vector<2x128xf32>
    %190 = tpu.matmul %188, %163, %cst_36 {dimension_numbers = #tpu.dot_dimension_numbers<[1], [0], [0], [1], [0, 0, 1, 1], [], []>} : vector<2x32xf32>, vector<32x128xf32>, vector<2x128xf32> -> vector<2x128xf32>
    %191 = arith.addf %189, %190 : vector<2x128xf32>
    %192 = vector.extract_strided_slice %191 {offsets = [0, 0], sizes = [2, 96], strides = [1, 1]} : vector<2x128xf32> to vector<2x96xf32>
    %193 = arith.negf %192 : vector<2x96xf32>
    %194 = math.exp %193 : vector<2x96xf32>
    %cst_37 = arith.constant 1.000000e+00 : f32
    %195 = vector.broadcast %cst_37 : f32 to vector<2x96xf32>
    %196 = arith.addf %195, %194 : vector<2x96xf32>
    %197 = arith.divf %195, %196 : vector<2x96xf32>
    %198 = vector.extract_strided_slice %191 {offsets = [0, 96], sizes = [2, 32], strides = [1, 1]} : vector<2x128xf32> to vector<2x32xf32>
    %199 = math.tanh %198 : vector<2x32xf32>
    %200 = vector.extract_strided_slice %197 {offsets = [0, 0], sizes = [2, 32], strides = [1, 1]} : vector<2x96xf32> to vector<2x32xf32>
    %201 = vector.extract_strided_slice %197 {offsets = [0, 32], sizes = [2, 32], strides = [1, 1]} : vector<2x96xf32> to vector<2x32xf32>
    %202 = vector.extract_strided_slice %197 {offsets = [0, 64], sizes = [2, 32], strides = [1, 1]} : vector<2x96xf32> to vector<2x32xf32>
    %203 = arith.mulf %201, %186 : vector<2x32xf32>
    %204 = arith.mulf %200, %199 : vector<2x32xf32>
    %205 = arith.addf %203, %204 : vector<2x32xf32>
    %206 = math.tanh %205 : vector<2x32xf32>
    %207 = arith.mulf %202, %206 : vector<2x32xf32>
    %208 = vector.extract_strided_slice %167 {offsets = [4, 0], sizes = [2, 128], strides = [1, 1]} : vector<16x128xf32> to vector<2x128xf32>
    %cst_38 = arith.constant dense<0.000000e+00> : vector<2x128xf32>
    %209 = tpu.matmul %207, %163, %cst_38 {dimension_numbers = #tpu.dot_dimension_numbers<[1], [0], [0], [1], [0, 0, 1, 1], [], []>} : vector<2x32xf32>, vector<32x128xf32>, vector<2x128xf32> -> vector<2x128xf32>
    %210 = arith.addf %208, %209 : vector<2x128xf32>
    %211 = vector.extract_strided_slice %210 {offsets = [0, 0], sizes = [2, 96], strides = [1, 1]} : vector<2x128xf32> to vector<2x96xf32>
    %212 = arith.negf %211 : vector<2x96xf32>
    %213 = math.exp %212 : vector<2x96xf32>
    %cst_39 = arith.constant 1.000000e+00 : f32
    %214 = vector.broadcast %cst_39 : f32 to vector<2x96xf32>
    %215 = arith.addf %214, %213 : vector<2x96xf32>
    %216 = arith.divf %214, %215 : vector<2x96xf32>
    %217 = vector.extract_strided_slice %210 {offsets = [0, 96], sizes = [2, 32], strides = [1, 1]} : vector<2x128xf32> to vector<2x32xf32>
    %218 = math.tanh %217 : vector<2x32xf32>
    %219 = vector.extract_strided_slice %216 {offsets = [0, 0], sizes = [2, 32], strides = [1, 1]} : vector<2x96xf32> to vector<2x32xf32>
    %220 = vector.extract_strided_slice %216 {offsets = [0, 32], sizes = [2, 32], strides = [1, 1]} : vector<2x96xf32> to vector<2x32xf32>
    %221 = vector.extract_strided_slice %216 {offsets = [0, 64], sizes = [2, 32], strides = [1, 1]} : vector<2x96xf32> to vector<2x32xf32>
    %222 = arith.mulf %220, %205 : vector<2x32xf32>
    %223 = arith.mulf %219, %218 : vector<2x32xf32>
    %224 = arith.addf %222, %223 : vector<2x32xf32>
    %225 = math.tanh %224 : vector<2x32xf32>
    %226 = arith.mulf %221, %225 : vector<2x32xf32>
    %227 = vector.extract_strided_slice %167 {offsets = [6, 0], sizes = [2, 128], strides = [1, 1]} : vector<16x128xf32> to vector<2x128xf32>
    %cst_40 = arith.constant dense<0.000000e+00> : vector<2x128xf32>
    %228 = tpu.matmul %226, %163, %cst_40 {dimension_numbers = #tpu.dot_dimension_numbers<[1], [0], [0], [1], [0, 0, 1, 1], [], []>} : vector<2x32xf32>, vector<32x128xf32>, vector<2x128xf32> -> vector<2x128xf32>
    %229 = arith.addf %227, %228 : vector<2x128xf32>
    %230 = vector.extract_strided_slice %229 {offsets = [0, 0], sizes = [2, 96], strides = [1, 1]} : vector<2x128xf32> to vector<2x96xf32>
    %231 = arith.negf %230 : vector<2x96xf32>
    %232 = math.exp %231 : vector<2x96xf32>
    %cst_41 = arith.constant 1.000000e+00 : f32
    %233 = vector.broadcast %cst_41 : f32 to vector<2x96xf32>
    %234 = arith.addf %233, %232 : vector<2x96xf32>
    %235 = arith.divf %233, %234 : vector<2x96xf32>
    %236 = vector.extract_strided_slice %229 {offsets = [0, 96], sizes = [2, 32], strides = [1, 1]} : vector<2x128xf32> to vector<2x32xf32>
    %237 = math.tanh %236 : vector<2x32xf32>
    %238 = vector.extract_strided_slice %235 {offsets = [0, 0], sizes = [2, 32], strides = [1, 1]} : vector<2x96xf32> to vector<2x32xf32>
    %239 = vector.extract_strided_slice %235 {offsets = [0, 32], sizes = [2, 32], strides = [1, 1]} : vector<2x96xf32> to vector<2x32xf32>
    %240 = vector.extract_strided_slice %235 {offsets = [0, 64], sizes = [2, 32], strides = [1, 1]} : vector<2x96xf32> to vector<2x32xf32>
    %241 = arith.mulf %239, %224 : vector<2x32xf32>
    %242 = arith.mulf %238, %237 : vector<2x32xf32>
    %243 = arith.addf %241, %242 : vector<2x32xf32>
    %244 = math.tanh %243 : vector<2x32xf32>
    %245 = arith.mulf %240, %244 : vector<2x32xf32>
    %246 = vector.extract_strided_slice %167 {offsets = [8, 0], sizes = [2, 128], strides = [1, 1]} : vector<16x128xf32> to vector<2x128xf32>
    %cst_42 = arith.constant dense<0.000000e+00> : vector<2x128xf32>
    %247 = tpu.matmul %245, %163, %cst_42 {dimension_numbers = #tpu.dot_dimension_numbers<[1], [0], [0], [1], [0, 0, 1, 1], [], []>} : vector<2x32xf32>, vector<32x128xf32>, vector<2x128xf32> -> vector<2x128xf32>
    %248 = arith.addf %246, %247 : vector<2x128xf32>
    %249 = vector.extract_strided_slice %248 {offsets = [0, 0], sizes = [2, 96], strides = [1, 1]} : vector<2x128xf32> to vector<2x96xf32>
    %250 = arith.negf %249 : vector<2x96xf32>
    %251 = math.exp %250 : vector<2x96xf32>
    %cst_43 = arith.constant 1.000000e+00 : f32
    %252 = vector.broadcast %cst_43 : f32 to vector<2x96xf32>
    %253 = arith.addf %252, %251 : vector<2x96xf32>
    %254 = arith.divf %252, %253 : vector<2x96xf32>
    %255 = vector.extract_strided_slice %248 {offsets = [0, 96], sizes = [2, 32], strides = [1, 1]} : vector<2x128xf32> to vector<2x32xf32>
    %256 = math.tanh %255 : vector<2x32xf32>
    %257 = vector.extract_strided_slice %254 {offsets = [0, 0], sizes = [2, 32], strides = [1, 1]} : vector<2x96xf32> to vector<2x32xf32>
    %258 = vector.extract_strided_slice %254 {offsets = [0, 32], sizes = [2, 32], strides = [1, 1]} : vector<2x96xf32> to vector<2x32xf32>
    %259 = vector.extract_strided_slice %254 {offsets = [0, 64], sizes = [2, 32], strides = [1, 1]} : vector<2x96xf32> to vector<2x32xf32>
    %260 = arith.mulf %258, %243 : vector<2x32xf32>
    %261 = arith.mulf %257, %256 : vector<2x32xf32>
    %262 = arith.addf %260, %261 : vector<2x32xf32>
    %263 = math.tanh %262 : vector<2x32xf32>
    %264 = arith.mulf %259, %263 : vector<2x32xf32>
    %265 = vector.extract_strided_slice %167 {offsets = [10, 0], sizes = [2, 128], strides = [1, 1]} : vector<16x128xf32> to vector<2x128xf32>
    %cst_44 = arith.constant dense<0.000000e+00> : vector<2x128xf32>
    %266 = tpu.matmul %264, %163, %cst_44 {dimension_numbers = #tpu.dot_dimension_numbers<[1], [0], [0], [1], [0, 0, 1, 1], [], []>} : vector<2x32xf32>, vector<32x128xf32>, vector<2x128xf32> -> vector<2x128xf32>
    %267 = arith.addf %265, %266 : vector<2x128xf32>
    %268 = vector.extract_strided_slice %267 {offsets = [0, 0], sizes = [2, 96], strides = [1, 1]} : vector<2x128xf32> to vector<2x96xf32>
    %269 = arith.negf %268 : vector<2x96xf32>
    %270 = math.exp %269 : vector<2x96xf32>
    %cst_45 = arith.constant 1.000000e+00 : f32
    %271 = vector.broadcast %cst_45 : f32 to vector<2x96xf32>
    %272 = arith.addf %271, %270 : vector<2x96xf32>
    %273 = arith.divf %271, %272 : vector<2x96xf32>
    %274 = vector.extract_strided_slice %267 {offsets = [0, 96], sizes = [2, 32], strides = [1, 1]} : vector<2x128xf32> to vector<2x32xf32>
    %275 = math.tanh %274 : vector<2x32xf32>
    %276 = vector.extract_strided_slice %273 {offsets = [0, 0], sizes = [2, 32], strides = [1, 1]} : vector<2x96xf32> to vector<2x32xf32>
    %277 = vector.extract_strided_slice %273 {offsets = [0, 32], sizes = [2, 32], strides = [1, 1]} : vector<2x96xf32> to vector<2x32xf32>
    %278 = vector.extract_strided_slice %273 {offsets = [0, 64], sizes = [2, 32], strides = [1, 1]} : vector<2x96xf32> to vector<2x32xf32>
    %279 = arith.mulf %277, %262 : vector<2x32xf32>
    %280 = arith.mulf %276, %275 : vector<2x32xf32>
    %281 = arith.addf %279, %280 : vector<2x32xf32>
    %282 = math.tanh %281 : vector<2x32xf32>
    %283 = arith.mulf %278, %282 : vector<2x32xf32>
    %284 = vector.extract_strided_slice %167 {offsets = [12, 0], sizes = [2, 128], strides = [1, 1]} : vector<16x128xf32> to vector<2x128xf32>
    %cst_46 = arith.constant dense<0.000000e+00> : vector<2x128xf32>
    %285 = tpu.matmul %283, %163, %cst_46 {dimension_numbers = #tpu.dot_dimension_numbers<[1], [0], [0], [1], [0, 0, 1, 1], [], []>} : vector<2x32xf32>, vector<32x128xf32>, vector<2x128xf32> -> vector<2x128xf32>
    %286 = arith.addf %284, %285 : vector<2x128xf32>
    %287 = vector.extract_strided_slice %286 {offsets = [0, 0], sizes = [2, 96], strides = [1, 1]} : vector<2x128xf32> to vector<2x96xf32>
    %288 = arith.negf %287 : vector<2x96xf32>
    %289 = math.exp %288 : vector<2x96xf32>
    %cst_47 = arith.constant 1.000000e+00 : f32
    %290 = vector.broadcast %cst_47 : f32 to vector<2x96xf32>
    %291 = arith.addf %290, %289 : vector<2x96xf32>
    %292 = arith.divf %290, %291 : vector<2x96xf32>
    %293 = vector.extract_strided_slice %286 {offsets = [0, 96], sizes = [2, 32], strides = [1, 1]} : vector<2x128xf32> to vector<2x32xf32>
    %294 = math.tanh %293 : vector<2x32xf32>
    %295 = vector.extract_strided_slice %292 {offsets = [0, 0], sizes = [2, 32], strides = [1, 1]} : vector<2x96xf32> to vector<2x32xf32>
    %296 = vector.extract_strided_slice %292 {offsets = [0, 32], sizes = [2, 32], strides = [1, 1]} : vector<2x96xf32> to vector<2x32xf32>
    %297 = vector.extract_strided_slice %292 {offsets = [0, 64], sizes = [2, 32], strides = [1, 1]} : vector<2x96xf32> to vector<2x32xf32>
    %298 = arith.mulf %296, %281 : vector<2x32xf32>
    %299 = arith.mulf %295, %294 : vector<2x32xf32>
    %300 = arith.addf %298, %299 : vector<2x32xf32>
    %301 = math.tanh %300 : vector<2x32xf32>
    %302 = arith.mulf %297, %301 : vector<2x32xf32>
    %303 = vector.extract_strided_slice %167 {offsets = [14, 0], sizes = [2, 128], strides = [1, 1]} : vector<16x128xf32> to vector<2x128xf32>
    %cst_48 = arith.constant dense<0.000000e+00> : vector<2x128xf32>
    %304 = tpu.matmul %302, %163, %cst_48 {dimension_numbers = #tpu.dot_dimension_numbers<[1], [0], [0], [1], [0, 0, 1, 1], [], []>} : vector<2x32xf32>, vector<32x128xf32>, vector<2x128xf32> -> vector<2x128xf32>
    %305 = arith.addf %303, %304 : vector<2x128xf32>
    %306 = vector.extract_strided_slice %305 {offsets = [0, 0], sizes = [2, 96], strides = [1, 1]} : vector<2x128xf32> to vector<2x96xf32>
    %307 = arith.negf %306 : vector<2x96xf32>
    %308 = math.exp %307 : vector<2x96xf32>
    %cst_49 = arith.constant 1.000000e+00 : f32
    %309 = vector.broadcast %cst_49 : f32 to vector<2x96xf32>
    %310 = arith.addf %309, %308 : vector<2x96xf32>
    %311 = arith.divf %309, %310 : vector<2x96xf32>
    %312 = vector.extract_strided_slice %305 {offsets = [0, 96], sizes = [2, 32], strides = [1, 1]} : vector<2x128xf32> to vector<2x32xf32>
    %313 = math.tanh %312 : vector<2x32xf32>
    %314 = vector.extract_strided_slice %311 {offsets = [0, 0], sizes = [2, 32], strides = [1, 1]} : vector<2x96xf32> to vector<2x32xf32>
    %315 = vector.extract_strided_slice %311 {offsets = [0, 32], sizes = [2, 32], strides = [1, 1]} : vector<2x96xf32> to vector<2x32xf32>
    %316 = vector.extract_strided_slice %311 {offsets = [0, 64], sizes = [2, 32], strides = [1, 1]} : vector<2x96xf32> to vector<2x32xf32>
    %317 = arith.mulf %315, %300 : vector<2x32xf32>
    %318 = arith.mulf %314, %313 : vector<2x32xf32>
    %319 = arith.addf %317, %318 : vector<2x32xf32>
    %320 = math.tanh %319 : vector<2x32xf32>
    %321 = arith.mulf %316, %320 : vector<2x32xf32>
    %322 = tpu.concatenate %188, %207, %226, %245, %264, %283, %302, %321 in 0 : vector<2x32xf32>, vector<2x32xf32>, vector<2x32xf32>, vector<2x32xf32>, vector<2x32xf32>, vector<2x32xf32>, vector<2x32xf32>, vector<2x32xf32> -> vector<16x32xf32>
    %cst_50 = arith.constant 0.000000e+00 : f32
    %323 = vector.broadcast %cst_50 : f32 to vector<16x32xf32>
    %324 = arith.maximumf %322, %323 : vector<16x32xf32>
    %c0_51 = arith.constant 0 : index
    %c0_52 = arith.constant 0 : index
    %325 = vector.load %arg7[%c0_51, %c0_52] : memref<1x32xf32, #tpu.memory_space<vmem>>, vector<1x32xf32>
    %cst_53 = arith.constant dense<0.000000e+00> : vector<1x16xf32>
    %326 = tpu.matmul %325, %324, %cst_53 {dimension_numbers = #tpu.dot_dimension_numbers<[1], [1], [0], [0], [0, 0, 1, 0], [], []>} : vector<1x32xf32>, vector<16x32xf32>, vector<1x16xf32> -> vector<1x16xf32>
    %c0_54 = arith.constant 0 : index
    %c0_55 = arith.constant 0 : index
    %327 = vector.load %arg8[%c0_54, %c0_55] : memref<1x1xf32, #tpu.memory_space<vmem>>, vector<1x1xf32>
    %328 = vector.broadcast %327 : vector<1x1xf32> to vector<1x16xf32>
    %329 = arith.addf %326, %328 : vector<1x16xf32>
    %c0_56 = arith.constant 0 : index
    %c0_57 = arith.constant 0 : index
    %330 = vector.load %arg9[%c0_56, %c0_57] : memref<1x16xf32, #tpu.memory_space<vmem>>, vector<1x16xf32>
    tpu.vector_store %arg9[%c0_56, %c0_57], %329 {strides = array<i32>} : memref<1x16xf32, #tpu.memory_space<vmem>>, vector<1x16xf32>,
    return
  }
}

</mosaic_0001>

<bundles_post_ra>
// kernel: lstm_forward.1
= control target key start
LH: loop header
LB: loop body
LE: loop exit
PB: predicated region body
PF: predicated region fallthrough
CT: control target
= control target key end

     0   :  { %vm55_vm0 = vcmask 1043456   ;;  %vm48_vm1 = vcmask 31744   ;;  %v2612_v0 = vmov 0.0|0.0   ;;  %vm2613_vm2 = vmmov 0   ;;  %s2615_s22 = smov 32   ;;  %s2986_s2 = inlined_call_operand.vmem [shape: f32[32,128], index: 2, kind: input, shape index: {}]   ;;  %s2987_s1 = inlined_call_operand.vmem [shape: f32[4,128], index: 1, kind: input, shape index: {}]   ;;  %s2988_s0 = inlined_call_operand.vmem [shape: f32[16,4], index: 0, kind: input, shape index: {}]   ;;  %s2989_s3 = inlined_call_operand.vmem [shape: f32[1,128], index: 3, kind: input, shape index: {}]   ;;  %s2990_s4 = inlined_call_operand.vmem [shape: f32[32,128], index: 4, kind: input, shape index: {}]   ;;  %s2991_s5 = inlined_call_operand.vmem [shape: f32[32,128], index: 5, kind: input, shape index: {}]   ;;  %s2992_s6 = inlined_call_operand.vmem [shape: f32[1,128], index: 6, kind: input, shape index: {}]   ;;  %s2993_s8 = inlined_call_operand.<no memory space> [shape: f32[1,1], index: 8, kind: input, shape index: {}]   ;;  %s2994_s7 = inlined_call_operand.vmem [shape: f32[1,32], index: 7, kind: input, shape index: {}]   ;;  %s2995_s9 = inlined_call_operand.vmem [shape: f32[1,16], index: 9, kind: output, shape index: {}]  }
   0x1   :  { %2363 = vmatprep.subr.bf16.mxu1 %v2612_v0  ;;  %v37_v1 = vld [vmem:[%s2986_s2] sm:$0xff]  ;;  %v38_v2 = vld [vmem:[%s2986_s2 + $0x8] sm:$0xff]  ;;  %v39_v7 = vld [vmem:[%s2986_s2 + $0x10] sm:$0xff]  ;;  %v2614_v8 = vmov 0.0   ;;  %vm134_vm3 = vcmask 261120   ;;  %vm977_vm4 = vcmask 1041408  }
   0x2   :  { %v36_v3 = vld [vmem:[%s2987_s1] sm:$0xf]  ;;  %v2678_v4 = vpack.c.bf16 %v38_v2, %v37_v1  ;;  %v35_v6 = vld [vmem:[%s2988_s0 + $0x8] sm:$0xff]  ;;  %2177 = vmatprep.mubr.msk.f32.mxu1 %vm2613_vm2, %v2614_v8  ;;  %v40_v9 = vld [vmem:[%s2986_s2 + $0x18] sm:$0xff]  ;;  %vm980_vm5 = vcmask 1045504   ;;  %vm2026_vm7 = vcmask 122880  }
   0x3   :  { %2164 = vmatprep.subr.msk.mxu0 %vm55_vm0, %v36_v3  ;;  %v34_v5 = vld [vmem:[%s2988_s0] sm:$0xff]  ;;  %v2699_v10 = vpack.c.bf16 %v40_v9, %v39_v7  ;;  %vm2469_vm6 = vmpackc.low %vm134_vm3, %vm134_vm3 }
   0x4   :  { %2165 = vmatpush3.msk.msra.mxu0 %vm55_vm0, %v36_v3  ;;  %2166 = vmatprep.mubr.msk.f32.mxu0 %vm48_vm1, %v34_v5  ;;  %v2032_v11 = vld [vmem:[%s2989_s3] ss:$0 sm:$0xff]  ;;  %s2616_s3 = smov 64  }
   0x5   :  { %2365 = vmatpush3.bf16.msra.mxu1 %v2678_v4  ;;  %2167 = vmatmul.mubr.msk.f32.vlgmr.msra.gmra.mrb[0].mxu0 %vm48_vm1, %v35_v6 }
   0x6   :  { %2366 = vmatprep.subr.bf16.mxu1 %v2612_v0  ;;  %2369 = vmatprep.subr.bf16.mxu0 %v2612_v0 }
   0x7   :  { %2371 = vmatpush3.bf16.msra.mxu0 %v2678_v4  ;;  %2188 = vmatprep.mubr.msk.f32.mxu0 %vm2613_vm2, %v2614_v8 }
   0x8   :  { %2372 = vmatprep.subr.bf16.mxu0 %v2612_v0 }
   0x9   :  { %2368 = vmatpush3.bf16.msra.mxu1 %v2699_v10 }
   0xa   :  { %2375 = vmatprep.subr.bf16.mxu1 %v2612_v0 }
   0xb   :  { %2374 = vmatpush3.bf16.msra.mxu0 %v2699_v10 }
   0xc   :  { %2178 = vmatmul.mubr.f32.vlgmr.msra.gmra.mrb[0].mxu1 %v2614_v8  ;;  %2381 = vmatprep.subr.bf16.mxu0 %v2612_v0 }
   0xd   :  { %2377 = vmatpush3.bf16.msra.mxu1 %v2678_v4  ;;  %2199 = vmatprep.mubr.msk.f32.mxu1 %vm2613_vm2, %v2614_v8 }
   0xe   :  { %2378 = vmatprep.subr.bf16.mxu1 %v2612_v0 }
  0x11   :  { %2380 = vmatpush3.bf16.msra.mxu1 %v2699_v10 }
  0x12   :  { %2387 = vmatprep.subr.bf16.mxu1 %v2612_v0 }
  0xd8   :  { %v2168_v12 = vpop.f32.mrb[0].mxu0 }
  0xd9   :  { %v2721_v13 = vadd.f32 %v2168_v12, %v2032_v11  ;;  %v125_v14 = vpop.f32.mrb[1].mxu0 }
  0xda   :  { %v2723_v15 = vadd.f32 %v2032_v11, %v125_v14 }
  0xdf   :  { %v204_v16 = vpop.f32.mrb[0].mxu1 }
  0xe0   :  { %v208_v17 = vadd.f32 %v204_v16, %v2723_v15  ;;  %v2179_v18 = vpop.f32.mrb[1].mxu1 }
  0xe2   :  { %2484 = vtanh.f32 %v208_v17  ;;  %v2036_v20 = vmul.f32 -1.442695, %v208_v17 }
  0xe4   :  { %2486 = vpow2.f32 %v2036_v20 }
  0xec   :  { %v2485_v19 = vpop.eup %2484 }
  0xed   :  { %218 = vrot.lane.b32.xlu0 %v2485_v19, %s2615_s22 }
  0xee   :  { %v2487_v21 = vpop.eup %2486 }
  0xef   :  { %v212_v22 = vadd.f32 1.0, %v2487_v21 }
  0xf1   :  { %2488 = vrcp.f32 %v212_v22 }
  0xfb   :  { %v2489_v23 = vpop.eup %2488 }
  0xfc   :  { %v216_v26 = vmul.f32 0.0, %v2489_v23 }
 0x15f   :  { %v219_v24 = vpop.permute.xlu0 %218 }
 0x160   :  { %v221_v25 = vmul.f32 %v2489_v23, %v219_v24 }
 0x162   :  { %223 = vrot.lane.b32.xlu0 %v221_v25, %s2615_s22 }
 0x1d4   :  { %v224_v27 = vpop.permute.xlu0 %223 }
 0x1d5   :  { %v226_v28 = vadd.f32 %v224_v27, %v216_v26 }
 0x1d7   :  { %2490 = vtanh.f32 %v226_v28  ;;  %v320_v44 = vrot.slane %v226_v28, 6 }
 0x1e1   :  { %v2491_v29 = vpop.eup %2490 }
 0x1e2   :  { %229 = vrot.lane.b32.xlu1 %v2491_v29, %s2615_s22 }
 0x254   :  { %v230_v30 = vpop.permute.xlu1 %229 }
 0x255   :  { %v2729_v31 = vmul.f32 %v2489_v23, %v230_v30 }
 0x257   :  { %234 = vrot.lane.b32.xlu1 %v2729_v31, %s2616_s3 }
 0x2c9   :  { %v235_v32 = vpop.permute.xlu1 %234 }
 0x2ca   :  { %2189 = vmatmul.mubr.msk.f32.vlgmr.msra.gmra.mrb[2].mxu0 %vm134_vm3, %v235_v32 }
 0x2cb   :  { %2383 = vmatpush3.bf16.msra.mxu0 %v2678_v4  ;;  %2210 = vmatprep.mubr.msk.f32.mxu0 %vm2613_vm2, %v2614_v8 }
 0x2cc   :  { %2384 = vmatprep.subr.bf16.mxu0 %v2612_v0 }
 0x2cf   :  { %2386 = vmatpush3.bf16.msra.mxu0 %v2699_v10 }
 0x2d0   :  { %2393 = vmatprep.subr.bf16.mxu0 %v2612_v0 }
 0x39d   :  { %v304_v33 = vpop.f32.mrb[2].mxu0 }
 0x39e   :  { %v309_v34 = vrot.slane %v304_v33, 6  ;;  %v2190_v35 = vpop.f32.mrb[3].mxu0 }
 0x3a0   :  { %v311_v36 = vadd.f32 %v309_v34, %v2723_v15 }
 0x3a2   :  { %2492 = vtanh.f32 %v311_v36  ;;  %v2038_v38 = vmul.f32 -1.442695, %v311_v36 }
 0x3a4   :  { %2494 = vpow2.f32 %v2038_v38 }
 0x3ac   :  { %v2493_v37 = vpop.eup %2492 }
 0x3ad   :  { %324 = vrot.lane.b32.xlu0 %v2493_v37, %s2615_s22 }
 0x3ae   :  { %v2495_v39 = vpop.eup %2494 }
 0x3af   :  { %v315_v40 = vadd.f32 1.0, %v2495_v39 }
 0x3b1   :  { %2496 = vrcp.f32 %v315_v40 }
 0x3bb   :  { %v2497_v41 = vpop.eup %2496 }
 0x3bc   :  { %v322_v45 = vmul.f32 %v2497_v41, %v320_v44 }
 0x41f   :  { %v325_v42 = vpop.permute.xlu0 %324 }
 0x420   :  { %v327_v43 = vmul.f32 %v2497_v41, %v325_v42 }
 0x422   :  { %329 = vrot.lane.b32.xlu1 %v327_v43, %s2615_s22 }
 0x494   :  { %v330_v46 = vpop.permute.xlu1 %329 }
 0x495   :  { %v332_v47 = vadd.f32 %v330_v46, %v322_v45 }
 0x497   :  { %2498 = vtanh.f32 %v332_v47  ;;  %v427_v1 = vrot.slane %v332_v47, 6 }
 0x4a1   :  { %v2499_v48 = vpop.eup %2498 }
 0x4a2   :  { %335 = vrot.lane.b32.xlu0 %v2499_v48, %s2615_s22 }
 0x514   :  { %v336_v49 = vpop.permute.xlu0 %335 }
 0x515   :  { %v338_v50 = vmul.f32 %v2497_v41, %v336_v49 }
 0x517   :  { %v340_v51 = vrot.slane %v338_v50, 2  ;;  %v978_v11 = vsel %vm977_vm4, %v2729_v31, %v338_v50 }
 0x519   :  { %341 = vrot.lane.b32.xlu1 %v340_v51, %s2616_s3 }
 0x58b   :  { %v342_v52 = vpop.permute.xlu1 %341 }
 0x58c   :  { %2200 = vmatmul.mubr.msk.f32.vlgmr.msra.gmra.mrb[2].mxu1 %vm134_vm3, %v342_v52 }
 0x58d   :  { %2389 = vmatpush3.bf16.msra.mxu1 %v2678_v4  ;;  %2221 = vmatprep.mubr.msk.f32.mxu1 %vm2613_vm2, %v2614_v8 }
 0x58e   :  { %2390 = vmatprep.subr.bf16.mxu1 %v2612_v0 }
 0x591   :  { %2392 = vmatpush3.bf16.msra.mxu1 %v2699_v10 }
 0x592   :  { %2399 = vmatprep.subr.bf16.mxu1 %v2612_v0 }
 0x65f   :  { %v411_v53 = vpop.f32.mrb[2].mxu1 }
 0x660   :  { %v416_v54 = vrot.slane %v411_v53, 4  ;;  %v2201_v55 = vpop.f32.mrb[3].mxu1 }
 0x662   :  { %v418_v56 = vadd.f32 %v416_v54, %v2723_v15 }
 0x664   :  { %2500 = vtanh.f32 %v418_v56  ;;  %v2040_v58 = vmul.f32 -1.442695, %v418_v56 }
 0x666   :  { %2502 = vpow2.f32 %v2040_v58 }
 0x66e   :  { %v2501_v57 = vpop.eup %2500 }
 0x66f   :  { %431 = vrot.lane.b32.xlu0 %v2501_v57, %s2615_s22 }
 0x670   :  { %v2503_v59 = vpop.eup %2502 }
 0x671   :  { %v422_v60 = vadd.f32 1.0, %v2503_v59 }
 0x673   :  { %2504 = vrcp.f32 %v422_v60 }
 0x67d   :  { %v2505_v61 = vpop.eup %2504 }
 0x67e   :  { %v429_v2 = vmul.f32 %v2505_v61, %v427_v1 }
 0x6e1   :  { %v432_v62 = vpop.permute.xlu0 %431 }
 0x6e2   :  { %v434_v63 = vmul.f32 %v2505_v61, %v432_v62 }
 0x6e4   :  { %436 = vrot.lane.b32.xlu1 %v434_v63, %s2615_s22 }
 0x756   :  { %v437_v3 = vpop.permute.xlu1 %436 }
 0x757   :  { %v439_v5 = vadd.f32 %v437_v3, %v429_v2 }
 0x759   :  { %2506 = vtanh.f32 %v439_v5  ;;  %v534_v28 = vrot.slane %v439_v5, 6 }
 0x763   :  { %v2507_v6 = vpop.eup %2506 }
 0x764   :  { %442 = vrot.lane.b32.xlu0 %v2507_v6, %s2615_s22 }
 0x7d6   :  { %v443_v7 = vpop.permute.xlu0 %442 }
 0x7d7   :  { %v445_v9 = vmul.f32 %v2505_v61, %v443_v7 }
 0x7d9   :  { %v447_v12 = vrot.slane %v445_v9, 4  ;;  %v979_v14 = vsel %vm55_vm0, %v978_v11, %v445_v9 }
 0x7db   :  { %448 = vrot.lane.b32.xlu1 %v447_v12, %s2616_s3 }
 0x84d   :  { %v449_v16 = vpop.permute.xlu1 %448 }
 0x84e   :  { %2211 = vmatmul.mubr.msk.f32.vlgmr.msra.gmra.mrb[4].mxu0 %vm134_vm3, %v449_v16 }
 0x84f   :  { %2395 = vmatpush3.bf16.msra.mxu0 %v2678_v4  ;;  %2232 = vmatprep.mubr.msk.f32.mxu0 %vm2613_vm2, %v2614_v8 }
 0x850   :  { %2396 = vmatprep.subr.bf16.mxu0 %v2612_v0 }
 0x853   :  { %2398 = vmatpush3.bf16.msra.mxu0 %v2699_v10 }
 0x854   :  { %2405 = vmatprep.subr.bf16.mxu0 %v2612_v0 }
 0x921   :  { %v518_v17 = vpop.f32.mrb[4].mxu0 }
 0x922   :  { %v523_v18 = vrot.slane %v518_v17, 2  ;;  %v2212_v19 = vpop.f32.mrb[5].mxu0 }
 0x924   :  { %v525_v20 = vadd.f32 %v523_v18, %v2723_v15 }
 0x926   :  { %2508 = vtanh.f32 %v525_v20  ;;  %v2042_v22 = vmul.f32 -1.442695, %v525_v20 }
 0x928   :  { %2510 = vpow2.f32 %v2042_v22 }
 0x930   :  { %v2509_v21 = vpop.eup %2508 }
 0x931   :  { %538 = vrot.lane.b32.xlu0 %v2509_v21, %s2615_s22 }
 0x932   :  { %v2511_v23 = vpop.eup %2510 }
 0x933   :  { %v529_v24 = vadd.f32 1.0, %v2511_v23 }
 0x935   :  { %2512 = vrcp.f32 %v529_v24 }
 0x93f   :  { %v2513_v25 = vpop.eup %2512 }
 0x940   :  { %v536_v29 = vmul.f32 %v2513_v25, %v534_v28 }
 0x9a3   :  { %v539_v26 = vpop.permute.xlu0 %538 }
 0x9a4   :  { %v541_v27 = vmul.f32 %v2513_v25, %v539_v26 }
 0x9a6   :  { %543 = vrot.lane.b32.xlu1 %v541_v27, %s2615_s22 }
 0xa18   :  { %v544_v30 = vpop.permute.xlu1 %543 }
 0xa19   :  { %v546_v31 = vadd.f32 %v544_v30, %v536_v29 }
 0xa1b   :  { %2514 = vtanh.f32 %v546_v31  ;;  %v638_v47 = vrot.slane %v546_v31, 6 }
 0xa25   :  { %v2515_v15 = vpop.eup %2514 }
 0xa26   :  { %549 = vrot.lane.b32.xlu0 %v2515_v15, %s2615_s22 }
 0xa98   :  { %v550_v32 = vpop.permute.xlu0 %549 }
 0xa99   :  { %v552_v33 = vmul.f32 %v2513_v25, %v550_v32 }
 0xa9b   :  { %v554_v34 = vrot.slane %v552_v33, 6  ;;  %v2772_v35 = vsel %vm980_vm5, %v979_v14, %v552_v33 }
 0xa9d   :  { %555 = vrot.lane.b32.xlu1 %v554_v34, %s2616_s3 }
 0xb0f   :  { %v556_v36 = vpop.permute.xlu1 %555 }
 0xb10   :  { %2222 = vmatmul.mubr.msk.f32.vlgmr.msra.gmra.mrb[4].mxu1 %vm134_vm3, %v556_v36 }
 0xb11   :  { %2401 = vmatpush3.bf16.msra.mxu1 %v2678_v4  ;;  %2243 = vmatprep.mubr.msk.f32.mxu1 %vm2613_vm2, %v2614_v8 }
 0xb12   :  { %2402 = vmatprep.subr.bf16.mxu1 %v2612_v0 }
 0xb15   :  { %2404 = vmatpush3.bf16.msra.mxu1 %v2699_v10 }
 0xbe3   :  { %v625_v37 = vpop.f32.mrb[4].mxu1 }
 0xbe4   :  { %v629_v38 = vadd.f32 %v625_v37, %v2721_v13  ;;  %v2223_v39 = vpop.f32.mrb[5].mxu1 }
 0xbe6   :  { %2516 = vtanh.f32 %v629_v38  ;;  %v2044_v41 = vmul.f32 -1.442695, %v629_v38 }
 0xbe8   :  { %2518 = vpow2.f32 %v2044_v41 }
 0xbf0   :  { %v2517_v40 = vpop.eup %2516 }
 0xbf1   :  { %642 = vrot.lane.b32.xlu0 %v2517_v40, %s2615_s22 }
 0xbf2   :  { %v2519_v42 = vpop.eup %2518 }
 0xbf3   :  { %v633_v43 = vadd.f32 1.0, %v2519_v42 }
 0xbf5   :  { %2520 = vrcp.f32 %v633_v43 }
 0xbff   :  { %v2521_v44 = vpop.eup %2520 }
 0xc00   :  { %v640_v48 = vmul.f32 %v2521_v44, %v638_v47 }
 0xc63   :  { %v643_v45 = vpop.permute.xlu0 %642 }
 0xc64   :  { %v645_v46 = vmul.f32 %v2521_v44, %v643_v45 }
 0xc66   :  { %647 = vrot.lane.b32.xlu1 %v645_v46, %s2615_s22 }
 0xcd8   :  { %v648_v49 = vpop.permute.xlu1 %647 }
 0xcd9   :  { %v650_v50 = vadd.f32 %v648_v49, %v640_v48 }
 0xcdb   :  { %2522 = vtanh.f32 %v650_v50 }
 0xce5   :  { %v2523_v51 = vpop.eup %2522 }
 0xce6   :  { %653 = vrot.lane.b32.xlu0 %v2523_v51, %s2615_s22 }
 0xd58   :  { %v654_v52 = vpop.permute.xlu0 %653 }
 0xd59   :  { %v2785_v53 = vmul.f32 %v2521_v44, %v654_v52  ;;  %v985_v52 = vld [vmem:[%s2990_s4] sm:$0xff] }
 0xd5b   :  { %658 = vrot.lane.b32.xlu1 %v2785_v53, %s2616_s3 }
 0xdcd   :  { %v659_v54 = vpop.permute.xlu1 %658 }
 0xdce   :  { %2233 = vmatmul.mubr.msk.f32.vlgmr.msra.gmra.mrb[6].mxu0 %vm134_vm3, %v659_v54 }
 0xdcf   :  { %2407 = vmatpush3.bf16.msra.mxu0 %v2678_v4  ;;  %2254 = vmatprep.mubr.msk.f32.mxu0 %vm2613_vm2, %v2614_v8 }
 0xdd0   :  { %2408 = vmatprep.subr.bf16.mxu0 %v2612_v0 }
 0xdd3   :  { %2410 = vmatpush3.bf16.msra.mxu0 %v2699_v10  ;;  %v744_v10 = vrot.slane %v650_v50, 6 }
 0xdd4   :  { %2419 = vmatprep.subr.bf16.mxu0 %v2612_v0 }
 0xea1   :  { %v728_v55 = vpop.f32.mrb[6].mxu0 }
 0xea2   :  { %v733_v56 = vrot.slane %v728_v55, 6  ;;  %v2234_v57 = vpop.f32.mrb[7].mxu0  ;;  %v990_v55 = vld [vmem:[%s2991_s5 + $0x8] sm:$0xff] }
 0xea3   :  { %v988_v57 = vld [vmem:[%s2990_s4 + $0x18] sm:$0xff] }
 0xea4   :  { %v735_v58 = vadd.f32 %v733_v56, %v2721_v13  ;;  %v987_v56 = vld [vmem:[%s2990_s4 + $0x10] sm:$0xff] }
 0xea6   :  { %2524 = vtanh.f32 %v735_v58  ;;  %v2046_v60 = vmul.f32 -1.442695, %v735_v58 }
 0xea8   :  { %2526 = vpow2.f32 %v2046_v60  ;;  %v991_v60 = vld [vmem:[%s2991_s5 + $0x10] sm:$0xff] }
 0xeb0   :  { %v2525_v59 = vpop.eup %2524 }
 0xeb1   :  { %748 = vrot.lane.b32.xlu0 %v2525_v59, %s2615_s22  ;;  %v2415_v59 = vpack.c.bf16 %v988_v57, %v987_v56 }
 0xeb2   :  { %v2527_v4 = vpop.eup %2526 }
 0xeb3   :  { %v739_v61 = vadd.f32 1.0, %v2527_v4  ;;  %v992_v4 = vld [vmem:[%s2991_s5 + $0x18] sm:$0xff] }
 0xeb5   :  { %2528 = vrcp.f32 %v739_v61  ;;  %v2848_v61 = vpack.c.bf16 %v992_v4, %v991_v60 }
 0xebf   :  { %v2529_v62 = vpop.eup %2528 }
 0xec0   :  { %v746_v2 = vmul.f32 %v2529_v62, %v744_v10 }
 0xf23   :  { %v749_v63 = vpop.permute.xlu0 %748 }
 0xf24   :  { %v751_v1 = vmul.f32 %v2529_v62, %v749_v63 }
 0xf26   :  { %753 = vrot.lane.b32.xlu1 %v751_v1, %s2615_s22 }
 0xf98   :  { %v754_v3 = vpop.permute.xlu1 %753 }
 0xf99   :  { %v756_v5 = vadd.f32 %v754_v3, %v746_v2 }
 0xf9b   :  { %2530 = vtanh.f32 %v756_v5  ;;  %v851_v26 = vrot.slane %v756_v5, 6 }
 0xfa5   :  { %v2531_v6 = vpop.eup %2530 }
 0xfa6   :  { %759 = vrot.lane.b32.xlu0 %v2531_v6, %s2615_s22  ;;  %v2051_v6 = vld [vmem:[%s2992_s6] ss:$0 sm:$0xff] }
0x1018   :  { %v760_v7 = vpop.permute.xlu0 %759 }
0x1019   :  { %v762_v9 = vmul.f32 %v2529_v62, %v760_v7 }
0x101b   :  { %v764_v11 = vrot.slane %v762_v9, 2  ;;  %v982_v32 = vsel %vm977_vm4, %v2785_v53, %v762_v9  ;;  %v986_v53 = vld [vmem:[%s2990_s4 + $0x8] sm:$0xff] }
0x101c   :  { %v2411_v54 = vpack.c.bf16 %v986_v53, %v985_v52 }
0x101d   :  { %765 = vrot.lane.b32.xlu1 %v764_v11, %s2616_s3 }
0x101e   :  { %2412 = vmatprep.subr.bf16.mxu1 %v2411_v54 }
0x108f   :  { %v766_v12 = vpop.permute.xlu1 %765 }
0x1090   :  { %2244 = vmatmul.mubr.msk.f32.vlgmr.msra.gmra.mrb[6].mxu1 %vm134_vm3, %v766_v12 }
0x1091   :  { %2414 = vmatpush3.bf16.msra.mxu1 %v2411_v54 }
0x1092   :  { %2416 = vmatprep.subr.bf16.mxu1 %v2415_v59 }
0x1095   :  { %2418 = vmatpush3.bf16.msra.mxu1 %v2415_v59 }
0x1096   :  { %2425 = vmatprep.subr.bf16.mxu1 %v2612_v0 }
0x1163   :  { %v835_v14 = vpop.f32.mrb[6].mxu1 }
0x1164   :  { %v840_v16 = vrot.slane %v835_v14, 4  ;;  %v2245_v17 = vpop.f32.mrb[7].mxu1 }
0x1166   :  { %v842_v18 = vadd.f32 %v840_v16, %v2721_v13 }
0x1168   :  { %2532 = vtanh.f32 %v842_v18  ;;  %v2048_v20 = vmul.f32 -1.442695, %v842_v18 }
0x116a   :  { %2534 = vpow2.f32 %v2048_v20 }
0x1172   :  { %v2533_v19 = vpop.eup %2532 }
0x1173   :  { %855 = vrot.lane.b32.xlu0 %v2533_v19, %s2615_s22 }
0x1174   :  { %v2535_v21 = vpop.eup %2534 }
0x1175   :  { %v846_v22 = vadd.f32 1.0, %v2535_v21 }
0x1177   :  { %2536 = vrcp.f32 %v846_v22 }
0x1181   :  { %v2537_v23 = vpop.eup %2536 }
0x1182   :  { %v853_v27 = vmul.f32 %v2537_v23, %v851_v26 }
0x11e5   :  { %v856_v24 = vpop.permute.xlu0 %855 }
0x11e6   :  { %v858_v25 = vmul.f32 %v2537_v23, %v856_v24 }
0x11e8   :  { %860 = vrot.lane.b32.xlu1 %v858_v25, %s2615_s22 }
0x125a   :  { %v861_v28 = vpop.permute.xlu1 %860 }
0x125b   :  { %v863_v29 = vadd.f32 %v861_v28, %v853_v27 }
0x125d   :  { %2538 = vtanh.f32 %v863_v29  ;;  %v958_v48 = vrot.slane %v863_v29, 6 }
0x1267   :  { %v2539_v30 = vpop.eup %2538 }
0x1268   :  { %866 = vrot.lane.b32.xlu0 %v2539_v30, %s2615_s22 }
0x12da   :  { %v867_v31 = vpop.permute.xlu0 %866 }
0x12db   :  { %v869_v15 = vmul.f32 %v2537_v23, %v867_v31 }
0x12dd   :  { %v871_v33 = vrot.slane %v869_v15, 4  ;;  %v2809_v34 = vsel %vm55_vm0, %v982_v32, %v869_v15 }
0x12df   :  { %872 = vrot.lane.b32.xlu1 %v871_v33, %s2616_s3 }
0x1351   :  { %v873_v36 = vpop.permute.xlu1 %872 }
0x1352   :  { %2255 = vmatmul.mubr.msk.f32.vlgmr.msra.gmra.mrb[8].mxu0 %vm134_vm3, %v873_v36 }
0x1353   :  { %2276 = vmatprep.mubr.msk.f32.mxu0 %vm2613_vm2, %v2614_v8 }
0x1425   :  { %v942_v37 = vpop.f32.mrb[8].mxu0 }
0x1426   :  { %v947_v38 = vrot.slane %v942_v37, 2  ;;  %v2256_v39 = vpop.f32.mrb[9].mxu0 }
0x1428   :  { %v949_v40 = vadd.f32 %v947_v38, %v2721_v13 }
0x142a   :  { %2540 = vtanh.f32 %v949_v40  ;;  %v2050_v42 = vmul.f32 -1.442695, %v949_v40 }
0x142c   :  { %2542 = vpow2.f32 %v2050_v42 }
0x1434   :  { %v2541_v41 = vpop.eup %2540 }
0x1435   :  { %962 = vrot.lane.b32.xlu0 %v2541_v41, %s2615_s22 }
0x1436   :  { %v2543_v43 = vpop.eup %2542 }
0x1437   :  { %v953_v44 = vadd.f32 1.0, %v2543_v43 }
0x1439   :  { %2544 = vrcp.f32 %v953_v44 }
0x1443   :  { %v2545_v45 = vpop.eup %2544 }
0x1444   :  { %v960_v49 = vmul.f32 %v2545_v45, %v958_v48 }
0x14a7   :  { %v963_v46 = vpop.permute.xlu0 %962 }
0x14a8   :  { %v965_v47 = vmul.f32 %v2545_v45, %v963_v46 }
0x14aa   :  { %967 = vrot.lane.b32.xlu1 %v965_v47, %s2615_s22 }
0x14ae   :  { %1002 = vrot.lane.b32.xlu1 %v2772_v35, %s2616_s3  ;;  %v989_v35 = vld [vmem:[%s2991_s5] sm:$0xff] }
0x14af   :  { %v2839_v58 = vpack.c.bf16 %v990_v55, %v989_v35 }
0x14b1   :  { %2421 = vmatpush3.bf16.msra.mxu0 %v2839_v58 }
0x14b2   :  { %2422 = vmatprep.subr.bf16.mxu0 %v2612_v0 }
0x14b5   :  { %2424 = vmatpush3.bf16.msra.mxu0 %v2848_v61 }
0x14b6   :  { %2431 = vmatprep.subr.bf16.mxu0 %v2612_v0 }
0x14b8   :  { %2277 = vmatmul.mubr.f32.vlgmr.msra.gmra.mrb[10].mxu0 %v2614_v8 }
0x14b9   :  { %2433 = vmatpush3.bf16.msra.mxu0 %v2839_v58  ;;  %2298 = vmatprep.mubr.msk.f32.mxu0 %vm2613_vm2, %v2614_v8 }
0x14ba   :  { %2434 = vmatprep.subr.bf16.mxu0 %v2612_v0 }
0x14bd   :  { %2436 = vmatpush3.bf16.msra.mxu0 %v2848_v61 }
0x14be   :  { %2443 = vmatprep.subr.bf16.mxu0 %v2612_v0 }
0x151c   :  { %v968_v13 = vpop.permute.xlu1 %967 }
0x151d   :  { %v970_v50 = vadd.f32 %v968_v13, %v960_v49 }
0x151f   :  { %2546 = vtanh.f32 %v970_v50 }
0x1520   :  { %v1003_v51 = vpop.permute.xlu1 %1002 }
0x1521   :  { %2265 = vmatprep.mubr.msk.f32.mxu1 %vm134_vm3, %v1003_v51 }
0x1529   :  { %v2547_v62 = vpop.eup %2546 }
0x152a   :  { %973 = vrot.lane.b32.xlu0 %v2547_v62, %s2615_s22 }
0x158b   :  { %v1151_v3 = vpop.f32.mrb[10].mxu0 }
0x158c   :  { %v2278_v5 = vpop.f32.mrb[11].mxu0 }
0x159c   :  { %v974_v63 = vpop.permute.xlu0 %973 }
0x159d   :  { %v976_v1 = vmul.f32 %v2545_v45, %v974_v63 }
0x159f   :  { %v984_v10 = vsel %vm980_vm5, %v2809_v34, %v976_v1 }
0x15a0   :  { %1004 = vrot.lane.b32.xlu0 %v984_v10, %s2616_s3 }
0x1612   :  { %v1005_v2 = vpop.permute.xlu0 %1004 }
0x1613   :  { %2266 = vmatmul.mubr.msk.f32.vlgmr.msra.gmra.mrb[8].mxu1 %vm134_vm3, %v1005_v2 }
0x1614   :  { %2427 = vmatpush3.bf16.msra.mxu1 %v2839_v58  ;;  %2287 = vmatprep.mubr.msk.f32.mxu1 %vm2613_vm2, %v2614_v8 }
0x1615   :  { %2428 = vmatprep.subr.bf16.mxu1 %v2612_v0 }
0x1618   :  { %2430 = vmatpush3.bf16.msra.mxu1 %v2848_v61 }
0x1619   :  { %2437 = vmatprep.subr.bf16.mxu1 %v2612_v0 }
0x16e6   :  { %v2267_v7 = vpop.f32.mrb[8].mxu1 }
0x16e7   :  { %v2875_v9 = vadd.f32 %v2267_v7, %v2051_v6  ;;  %v1076_v11 = vpop.f32.mrb[9].mxu1 }
0x16e8   :  { %v2877_v12 = vadd.f32 %v2051_v6, %v1076_v11 }
0x16ea   :  { %v1155_v14 = vadd.f32 %v1151_v3, %v2877_v12 }
0x16ec   :  { %2548 = vtanh.f32 %v1155_v14  ;;  %v2054_v17 = vmul.f32 -1.442695, %v1155_v14 }
0x16ee   :  { %2550 = vpow2.f32 %v2054_v17 }
0x16f6   :  { %v2549_v16 = vpop.eup %2548 }
0x16f7   :  { %1165 = vrot.lane.b32.xlu1 %v2549_v16, %s2615_s22 }
0x16f8   :  { %v2551_v18 = vpop.eup %2550 }
0x16f9   :  { %v1159_v19 = vadd.f32 1.0, %v2551_v18 }
0x16fb   :  { %2552 = vrcp.f32 %v1159_v19 }
0x1705   :  { %v2553_v20 = vpop.eup %2552 }
0x1706   :  { %v1163_v23 = vmul.f32 0.0, %v2553_v20 }
0x1769   :  { %v1166_v21 = vpop.permute.xlu1 %1165 }
0x176a   :  { %v1168_v22 = vmul.f32 %v2553_v20, %v1166_v21 }
0x176c   :  { %1170 = vrot.lane.b32.xlu0 %v1168_v22, %s2615_s22 }
0x17de   :  { %v1171_v24 = vpop.permute.xlu0 %1170 }
0x17df   :  { %v1173_v25 = vadd.f32 %v1171_v24, %v1163_v23 }
0x17e1   :  { %2554 = vtanh.f32 %v1173_v25  ;;  %v1267_v41 = vrot.slane %v1173_v25, 6 }
0x17eb   :  { %v2555_v26 = vpop.eup %2554 }
0x17ec   :  { %1176 = vrot.lane.b32.xlu1 %v2555_v26, %s2615_s22 }
0x185e   :  { %v1177_v27 = vpop.permute.xlu1 %1176 }
0x185f   :  { %v2883_v28 = vmul.f32 %v2553_v20, %v1177_v27 }
0x1861   :  { %1181 = vrot.lane.b32.xlu0 %v2883_v28, %s2616_s3 }
0x18d3   :  { %v1182_v29 = vpop.permute.xlu0 %1181 }
0x18d4   :  { %2288 = vmatmul.mubr.msk.f32.vlgmr.msra.gmra.mrb[10].mxu1 %vm134_vm3, %v1182_v29 }
0x18d5   :  { %2439 = vmatpush3.bf16.msra.mxu1 %v2839_v58  ;;  %2309 = vmatprep.mubr.msk.f32.mxu1 %vm2613_vm2, %v2614_v8 }
0x18d6   :  { %2440 = vmatprep.subr.bf16.mxu1 %v2612_v0 }
0x18d9   :  { %2442 = vmatpush3.bf16.msra.mxu1 %v2848_v61 }
0x18da   :  { %2449 = vmatprep.subr.bf16.mxu1 %v2612_v0 }
0x19a7   :  { %v1251_v30 = vpop.f32.mrb[10].mxu1 }
0x19a8   :  { %v1256_v31 = vrot.slane %v1251_v30, 6  ;;  %v2289_v15 = vpop.f32.mrb[11].mxu1 }
0x19aa   :  { %v1258_v32 = vadd.f32 %v1256_v31, %v2877_v12 }
0x19ac   :  { %2556 = vtanh.f32 %v1258_v32  ;;  %v2056_v34 = vmul.f32 -1.442695, %v1258_v32 }
0x19ae   :  { %2558 = vpow2.f32 %v2056_v34 }
0x19b6   :  { %v2557_v33 = vpop.eup %2556 }
0x19b7   :  { %1271 = vrot.lane.b32.xlu1 %v2557_v33, %s2615_s22 }
0x19b8   :  { %v2559_v36 = vpop.eup %2558 }
0x19b9   :  { %v1262_v37 = vadd.f32 1.0, %v2559_v36 }
0x19bb   :  { %2560 = vrcp.f32 %v1262_v37 }
0x19c5   :  { %v2561_v38 = vpop.eup %2560 }
0x19c6   :  { %v1269_v42 = vmul.f32 %v2561_v38, %v1267_v41 }
0x1a29   :  { %v1272_v39 = vpop.permute.xlu1 %1271 }
0x1a2a   :  { %v1274_v40 = vmul.f32 %v2561_v38, %v1272_v39 }
0x1a2c   :  { %1276 = vrot.lane.b32.xlu0 %v1274_v40, %s2615_s22 }
0x1a9e   :  { %v1277_v43 = vpop.permute.xlu0 %1276 }
0x1a9f   :  { %v1279_v44 = vadd.f32 %v1277_v43, %v1269_v42 }
0x1aa1   :  { %2562 = vtanh.f32 %v1279_v44  ;;  %v1374_v60 = vrot.slane %v1279_v44, 6 }
0x1aab   :  { %v2563_v45 = vpop.eup %2562 }
0x1aac   :  { %1282 = vrot.lane.b32.xlu1 %v2563_v45, %s2615_s22 }
0x1b1e   :  { %v1283_v46 = vpop.permute.xlu1 %1282 }
0x1b1f   :  { %v1285_v47 = vmul.f32 %v2561_v38, %v1283_v46 }
0x1b21   :  { %v1287_v48 = vrot.slane %v1285_v47, 2  ;;  %v1924_v3 = vsel %vm977_vm4, %v2883_v28, %v1285_v47 }
0x1b23   :  { %1288 = vrot.lane.b32.xlu0 %v1287_v48, %s2616_s3 }
0x1b95   :  { %v1289_v49 = vpop.permute.xlu0 %1288 }
0x1b96   :  { %2299 = vmatmul.mubr.msk.f32.vlgmr.msra.gmra.mrb[12].mxu0 %vm134_vm3, %v1289_v49 }
0x1b97   :  { %2445 = vmatpush3.bf16.msra.mxu0 %v2839_v58  ;;  %2320 = vmatprep.mubr.msk.f32.mxu0 %vm2613_vm2, %v2614_v8 }
0x1b98   :  { %2446 = vmatprep.subr.bf16.mxu0 %v2612_v0 }
0x1b9b   :  { %2448 = vmatpush3.bf16.msra.mxu0 %v2848_v61 }
0x1b9c   :  { %2455 = vmatprep.subr.bf16.mxu0 %v2612_v0 }
0x1c69   :  { %v1358_v13 = vpop.f32.mrb[12].mxu0 }
0x1c6a   :  { %v1363_v50 = vrot.slane %v1358_v13, 4  ;;  %v2300_v51 = vpop.f32.mrb[13].mxu0 }
0x1c6c   :  { %v1365_v52 = vadd.f32 %v1363_v50, %v2877_v12 }
0x1c6e   :  { %2564 = vtanh.f32 %v1365_v52  ;;  %v2058_v35 = vmul.f32 -1.442695, %v1365_v52 }
0x1c70   :  { %2566 = vpow2.f32 %v2058_v35 }
0x1c78   :  { %v2565_v53 = vpop.eup %2564 }
0x1c79   :  { %1378 = vrot.lane.b32.xlu1 %v2565_v53, %s2615_s22 }
0x1c7a   :  { %v2567_v54 = vpop.eup %2566 }
0x1c7b   :  { %v1369_v55 = vadd.f32 1.0, %v2567_v54 }
0x1c7d   :  { %2568 = vrcp.f32 %v1369_v55 }
0x1c87   :  { %v2569_v56 = vpop.eup %2568 }
0x1c88   :  { %v1376_v4 = vmul.f32 %v2569_v56, %v1374_v60 }
0x1ceb   :  { %v1379_v57 = vpop.permute.xlu1 %1378 }
0x1cec   :  { %v1381_v59 = vmul.f32 %v2569_v56, %v1379_v57 }
0x1cee   :  { %1383 = vrot.lane.b32.xlu0 %v1381_v59, %s2615_s22 }
0x1d60   :  { %v1384_v62 = vpop.permute.xlu0 %1383 }
0x1d61   :  { %v1386_v63 = vadd.f32 %v1384_v62, %v1376_v4 }
0x1d63   :  { %2570 = vtanh.f32 %v1386_v63  ;;  %v1481_v25 = vrot.slane %v1386_v63, 6 }
0x1d6d   :  { %v2571_v1 = vpop.eup %2570 }
0x1d6e   :  { %1389 = vrot.lane.b32.xlu1 %v2571_v1, %s2615_s22 }
0x1de0   :  { %v1390_v10 = vpop.permute.xlu1 %1389 }
0x1de1   :  { %v1392_v2 = vmul.f32 %v2569_v56, %v1390_v10 }
0x1de3   :  { %v1394_v5 = vrot.slane %v1392_v2, 4  ;;  %v1925_v6 = vsel %vm55_vm0, %v1924_v3, %v1392_v2 }
0x1de5   :  { %1395 = vrot.lane.b32.xlu0 %v1394_v5, %s2616_s3 }
0x1e57   :  { %v1396_v7 = vpop.permute.xlu0 %1395 }
0x1e58   :  { %2310 = vmatmul.mubr.msk.f32.vlgmr.msra.gmra.mrb[12].mxu1 %vm134_vm3, %v1396_v7 }
0x1e59   :  { %2451 = vmatpush3.bf16.msra.mxu1 %v2839_v58  ;;  %2331 = vmatprep.mubr.msk.f32.mxu1 %vm2613_vm2, %v2614_v8 }
0x1e5a   :  { %2452 = vmatprep.subr.bf16.mxu1 %v2612_v0 }
0x1e5d   :  { %2454 = vmatpush3.bf16.msra.mxu1 %v2848_v61 }
0x1e5e   :  { %2461 = vmatprep.subr.bf16.mxu1 %v2612_v0 }
0x1f2b   :  { %v1465_v11 = vpop.f32.mrb[12].mxu1 }
0x1f2c   :  { %v1470_v14 = vrot.slane %v1465_v11, 2  ;;  %v2311_v16 = vpop.f32.mrb[13].mxu1 }
0x1f2e   :  { %v1472_v17 = vadd.f32 %v1470_v14, %v2877_v12 }
0x1f30   :  { %2572 = vtanh.f32 %v1472_v17  ;;  %v2060_v19 = vmul.f32 -1.442695, %v1472_v17 }
0x1f32   :  { %2574 = vpow2.f32 %v2060_v19 }
0x1f3a   :  { %v2573_v18 = vpop.eup %2572 }
0x1f3b   :  { %1485 = vrot.lane.b32.xlu1 %v2573_v18, %s2615_s22 }
0x1f3c   :  { %v2575_v20 = vpop.eup %2574 }
0x1f3d   :  { %v1476_v21 = vadd.f32 1.0, %v2575_v20 }
0x1f3f   :  { %2576 = vrcp.f32 %v1476_v21 }
0x1f49   :  { %v2577_v22 = vpop.eup %2576 }
0x1f4a   :  { %v1483_v26 = vmul.f32 %v2577_v22, %v1481_v25 }
0x1fad   :  { %v1486_v23 = vpop.permute.xlu1 %1485 }
0x1fae   :  { %v1488_v24 = vmul.f32 %v2577_v22, %v1486_v23 }
0x1fb0   :  { %1490 = vrot.lane.b32.xlu0 %v1488_v24, %s2615_s22 }
0x2022   :  { %v1491_v27 = vpop.permute.xlu0 %1490 }
0x2023   :  { %v1493_v28 = vadd.f32 %v1491_v27, %v1483_v26 }
0x2025   :  { %2578 = vtanh.f32 %v1493_v28  ;;  %v1585_v44 = vrot.slane %v1493_v28, 6 }
0x202f   :  { %v2579_v12 = vpop.eup %2578 }
0x2030   :  { %1496 = vrot.lane.b32.xlu1 %v2579_v12, %s2615_s22 }
0x20a2   :  { %v1497_v29 = vpop.permute.xlu1 %1496 }
0x20a3   :  { %v1499_v30 = vmul.f32 %v2577_v22, %v1497_v29 }
0x20a5   :  { %v1501_v31 = vrot.slane %v1499_v30, 6  ;;  %v2926_v15 = vsel %vm980_vm5, %v1925_v6, %v1499_v30 }
0x20a7   :  { %1502 = vrot.lane.b32.xlu0 %v1501_v31, %s2616_s3 }
0x2119   :  { %v1503_v32 = vpop.permute.xlu0 %1502 }
0x211a   :  { %2321 = vmatmul.mubr.msk.f32.vlgmr.msra.gmra.mrb[14].mxu0 %vm134_vm3, %v1503_v32 }
0x211b   :  { %2457 = vmatpush3.bf16.msra.mxu0 %v2839_v58  ;;  %2342 = vmatprep.mubr.msk.f32.mxu0 %vm2613_vm2, %v2614_v8 }
0x211c   :  { %2458 = vmatprep.subr.bf16.mxu0 %v2612_v0 }
0x211f   :  { %2460 = vmatpush3.bf16.msra.mxu0 %v2848_v61 }
0x2120   :  { %2467 = vmatprep.subr.bf16.mxu0 %v2612_v0 }
0x21ed   :  { %v1572_v33 = vpop.f32.mrb[14].mxu0 }
0x21ee   :  { %v1576_v34 = vadd.f32 %v1572_v33, %v2875_v9  ;;  %v2322_v36 = vpop.f32.mrb[15].mxu0 }
0x21f0   :  { %2580 = vtanh.f32 %v1576_v34  ;;  %v2062_v38 = vmul.f32 -1.442695, %v1576_v34 }
0x21f2   :  { %2582 = vpow2.f32 %v2062_v38 }
0x21fa   :  { %v2581_v37 = vpop.eup %2580 }
0x21fb   :  { %1589 = vrot.lane.b32.xlu1 %v2581_v37, %s2615_s22 }
0x21fc   :  { %v2583_v39 = vpop.eup %2582 }
0x21fd   :  { %v1580_v40 = vadd.f32 1.0, %v2583_v39 }
0x21ff   :  { %2584 = vrcp.f32 %v1580_v40 }
0x2209   :  { %v2585_v41 = vpop.eup %2584 }
0x220a   :  { %v1587_v45 = vmul.f32 %v2585_v41, %v1585_v44 }
0x226d   :  { %v1590_v42 = vpop.permute.xlu1 %1589 }
0x226e   :  { %v1592_v43 = vmul.f32 %v2585_v41, %v1590_v42 }
0x2270   :  { %1594 = vrot.lane.b32.xlu0 %v1592_v43, %s2615_s22 }
0x22e2   :  { %v1595_v46 = vpop.permute.xlu0 %1594 }
0x22e3   :  { %v1597_v47 = vadd.f32 %v1595_v46, %v1587_v45 }
0x22e5   :  { %2586 = vtanh.f32 %v1597_v47 }
0x22ef   :  { %v2587_v48 = vpop.eup %2586 }
0x22f0   :  { %1600 = vrot.lane.b32.xlu1 %v2587_v48, %s2615_s22 }
0x2362   :  { %v1601_v49 = vpop.permute.xlu1 %1600 }
0x2363   :  { %v2940_v13 = vmul.f32 %v2585_v41, %v1601_v49 }
0x2365   :  { %1605 = vrot.lane.b32.xlu0 %v2940_v13, %s2616_s3 }
0x23d7   :  { %v1606_v50 = vpop.permute.xlu0 %1605 }
0x23d8   :  { %2332 = vmatmul.mubr.msk.f32.vlgmr.msra.gmra.mrb[14].mxu1 %vm134_vm3, %v1606_v50 }
0x23d9   :  { %2463 = vmatpush3.bf16.msra.mxu1 %v2839_v58  ;;  %2353 = vmatprep.mubr.msk.f32.mxu1 %vm2613_vm2, %v2614_v8 }
0x23da   :  { %2464 = vmatprep.subr.bf16.mxu1 %v2612_v0  ;;  %v1691_v0 = vrot.slane %v1597_v47, 6 }
0x23dd   :  { %2466 = vmatpush3.bf16.msra.mxu1 %v2848_v61 }
0x24ab   :  { %v1675_v51 = vpop.f32.mrb[14].mxu1 }
0x24ac   :  { %v1680_v52 = vrot.slane %v1675_v51, 6  ;;  %v2333_v53 = vpop.f32.mrb[15].mxu1 }
0x24ad   :  { %v14_v53 = vstv %s2993_s8 }
0x24ae   :  { %v1682_v35 = vadd.f32 %v1680_v52, %v2875_v9  ;;  %v2617_v52 = vmov 0   ;;  %15 = vst [vmem:[#allocation2] sm:$0x1] %v14_v53 }
0x24af   :  { %2482 = vset.pattern.permute.xlu1 %v2617_v52  ;;  %2483 = vset.pattern.permute.xlu0 %v2617_v52 }
0x24b0   :  { %2588 = vtanh.f32 %v1682_v35  ;;  %v2064_v55 = vmul.f32 -1.442695, %v1682_v35 }
0x24b2   :  { %2590 = vpow2.f32 %v2064_v55 }
0x24b5   :  { %v1933_v35 = vld [vmem:[#allocation2] sm:$0x1] }
0x24ba   :  { %v2589_v54 = vpop.eup %2588 }
0x24bb   :  { %1695 = vrot.lane.b32.xlu1 %v2589_v54, %s2615_s22 }
0x24bc   :  { %v2591_v56 = vpop.eup %2590 }
0x24bd   :  { %v1686_v58 = vadd.f32 1.0, %v2591_v56 }
0x24bf   :  { %2592 = vrcp.f32 %v1686_v58  ;;  %v1932_v58 = vld [vmem:[%s2994_s7] sm:$0x1] }
0x24c9   :  { %v2593_v57 = vpop.eup %2592 }
0x24ca   :  { %v1693_v61 = vmul.f32 %v2593_v57, %v1691_v0 }
0x252d   :  { %v1696_v59 = vpop.permute.xlu1 %1695 }
0x252e   :  { %v1698_v60 = vmul.f32 %v2593_v57, %v1696_v59 }
0x2530   :  { %1700 = vrot.lane.b32.xlu0 %v1698_v60, %s2615_s22 }
0x25a2   :  { %v1701_v4 = vpop.permute.xlu0 %1700 }
0x25a3   :  { %v1703_v62 = vadd.f32 %v1701_v4, %v1693_v61 }
0x25a5   :  { %2594 = vtanh.f32 %v1703_v62 }
0x25af   :  { %v2595_v63 = vpop.eup %2594 }
0x25b0   :  { %1706 = vrot.lane.b32.xlu1 %v2595_v63, %s2615_s22 }
0x2622   :  { %v1707_v1 = vpop.permute.xlu1 %1706 }
0x2623   :  { %v1709_v10 = vmul.f32 %v2593_v57, %v1707_v1  ;;  %v1939_v57 = vlaneseq }
0x2625   :  { %v1711_v2 = vrot.slane %v1709_v10, 2  ;;  %v1927_v28 = vsel %vm977_vm4, %v2940_v13, %v1709_v10  ;;  %v1930_v13 = vmax.f32 %v2926_v15, 0.0  ;;  %v1940_v59 = vshrl.u32 %v1939_v57, 7 }
0x2627   :  { %1712 = vrot.lane.b32.xlu0 %v1711_v2, %s2616_s3  ;;  %v1941_v60 = vsub.s32 0, %v1940_v59 }
0x2699   :  { %v1713_v3 = vpop.permute.xlu0 %1712 }
0x269a   :  { %2343 = vmatmul.mubr.msk.f32.vlgmr.msra.gmra.mrb[16].mxu0 %vm134_vm3, %v1713_v3 }
0x269b   :  { %2360 = vmatprep.mubr.msk.f32.mxu0 %vm2613_vm2, %v2614_v8  ;;  %v1798_v8 = vrot.slane %v1703_v62, 6 }
0x276d   :  { %v1782_v5 = vpop.f32.mrb[16].mxu0 }
0x276e   :  { %v1787_v6 = vrot.slane %v1782_v5, 4  ;;  %v2344_v7 = vpop.f32.mrb[17].mxu0 }
0x2770   :  { %v1789_v11 = vadd.f32 %v1787_v6, %v2875_v9 }
0x2772   :  { %2596 = vtanh.f32 %v1789_v11  ;;  %v2066_v16 = vmul.f32 -1.442695, %v1789_v11 }
0x2774   :  { %2598 = vpow2.f32 %v2066_v16 }
0x277c   :  { %v2597_v14 = vpop.eup %2596 }
0x277d   :  { %1802 = vrot.lane.b32.xlu1 %v2597_v14, %s2615_s22 }
0x277e   :  { %v2599_v17 = vpop.eup %2598 }
0x277f   :  { %v1793_v18 = vadd.f32 1.0, %v2599_v17 }
0x2781   :  { %2600 = vrcp.f32 %v1793_v18 }
0x278b   :  { %v2601_v19 = vpop.eup %2600 }
0x278c   :  { %v1800_v22 = vmul.f32 %v2601_v19, %v1798_v8 }
0x27ef   :  { %v1803_v20 = vpop.permute.xlu1 %1802 }
0x27f0   :  { %v1805_v21 = vmul.f32 %v2601_v19, %v1803_v20 }
0x27f2   :  { %1807 = vrot.lane.b32.xlu0 %v1805_v21, %s2615_s22 }
0x2864   :  { %v1808_v23 = vpop.permute.xlu0 %1807 }
0x2865   :  { %v1810_v24 = vadd.f32 %v1808_v23, %v1800_v22 }
0x2867   :  { %2602 = vtanh.f32 %v1810_v24  ;;  %v1905_v43 = vrot.slane %v1810_v24, 6 }
0x2871   :  { %v2603_v25 = vpop.eup %2602 }
0x2872   :  { %1813 = vrot.lane.b32.xlu1 %v2603_v25, %s2615_s22 }
0x28e4   :  { %v1814_v26 = vpop.permute.xlu1 %1813 }
0x28e5   :  { %v1816_v27 = vmul.f32 %v2601_v19, %v1814_v26 }
0x28e7   :  { %v1818_v12 = vrot.slane %v1816_v27, 4  ;;  %v1928_v29 = vsel %vm55_vm0, %v1927_v28, %v1816_v27 }
0x28e9   :  { %1819 = vrot.lane.b32.xlu0 %v1818_v12, %s2616_s3 }
0x295b   :  { %v1820_v30 = vpop.permute.xlu0 %1819 }
0x295c   :  { %2354 = vmatmul.mubr.msk.f32.vlgmr.msra.gmra.mrb[16].mxu1 %vm134_vm3, %v1820_v30 }
0x2a2f   :  { %v1889_v31 = vpop.f32.mrb[16].mxu1 }
0x2a30   :  { %v1894_v32 = vrot.slane %v1889_v31, 2  ;;  %v2355_v33 = vpop.f32.mrb[17].mxu1 }
0x2a32   :  { %v1896_v34 = vadd.f32 %v1894_v32, %v2875_v9 }
0x2a34   :  { %2604 = vtanh.f32 %v1896_v34  ;;  %v2068_v37 = vmul.f32 -1.442695, %v1896_v34 }
0x2a36   :  { %2606 = vpow2.f32 %v2068_v37 }
0x2a3e   :  { %v2605_v36 = vpop.eup %2604 }
0x2a3f   :  { %1909 = vrot.lane.b32.xlu1 %v2605_v36, %s2615_s22 }
0x2a40   :  { %v2607_v38 = vpop.eup %2606 }
0x2a41   :  { %v1900_v39 = vadd.f32 1.0, %v2607_v38 }
0x2a43   :  { %2608 = vrcp.f32 %v1900_v39 }
0x2a4d   :  { %v2609_v40 = vpop.eup %2608 }
0x2a4e   :  { %v1907_v44 = vmul.f32 %v2609_v40, %v1905_v43 }
0x2ab1   :  { %v1910_v41 = vpop.permute.xlu1 %1909 }
0x2ab2   :  { %v1912_v42 = vmul.f32 %v2609_v40, %v1910_v41 }
0x2ab4   :  { %1914 = vrot.lane.b32.xlu0 %v1912_v42, %s2615_s22 }
0x2b26   :  { %v1915_v45 = vpop.permute.xlu0 %1914 }
0x2b27   :  { %v1917_v46 = vadd.f32 %v1915_v45, %v1907_v44 }
0x2b29   :  { %2610 = vtanh.f32 %v1917_v46 }
0x2b33   :  { %v2611_v9 = vpop.eup %2610 }
0x2b34   :  { %1920 = vrot.lane.b32.xlu1 %v2611_v9, %s2615_s22 }
0x2b38   :  { %1936 = vperm.xlu1 %2482, %v1933_v35  }
0x2ba6   :  { %v1921_v47 = vpop.permute.xlu1 %1920 }
0x2ba7   :  { %v1923_v48 = vmul.f32 %v2609_v40, %v1921_v47 }
0x2ba9   :  { %v1929_v49 = vsel %vm980_vm5, %v1928_v29, %v1923_v48 }
0x2baa   :  { %v1931_v50 = vmax.f32 %v1929_v49, 0.0 }
0x2bac   :  { %v2477_v51 = vpack.i.bf16 %v1931_v50, %v1930_v13 }
0x2bae   :  { %2478 = vrot.lane.b32.xlu0 %v2477_v51, %s2616_s3 }
0x2bb7   :  { %v1937_v0 = vpop.permute.xlu1 %1936 }
0x2bb8   :  { %v1942_v61 = vrot.slane %v1937_v0, %v1941_v60 }
0x2c20   :  { %v2479_v54 = vpop.permute.xlu0 %2478 }
0x2c21   :  { %v2481_v55 = vunpack.i.h.bf16 %v2479_v54  ;;  %v2480_v56 = vunpack.i.l.bf16 %v2479_v54 }
0x2c23   :  { %v2468_v15 = vpack.c.bf16 %v2481_v55, %v2480_v56 }
0x2c25   :  { %2470 = vmatpush3.bf16.xpose.msk.msra.mxu0 %vm2469_vm6, %v2468_v15 }
0x2c2c   :  { %2361 = vmatmul.mubr.msk.f32.vlgmr.msra.gmra.mrb[18].mxu0 %vm134_vm3, %v1932_v58 }
0x2cff   :  { %v2022_v4 = vpop.f32.mrb[18].mxu0 }
0x2d00   :  { %v2023_v62 = vadd.f32 %v2022_v4, %v1942_v61  ;;  %v2362_v63 = vpop.f32.mrb[19].mxu0 }
0x2d02   :  { %2027 = vst.msk [vmem:[%s2995_s9] sm:$0x1] %vm2026_vm7, %v2023_v62 }

</bundles_post_ra>
